<compile_context>
chip_gen: v7x
topology: tpu7x:2x2x1
jax: 0.10.0
libtpu: 0.0.40
codegen_flags: <defaults>
</compile_context>

<pallas_src>
import functools
import math

import jax
import jax.numpy as jnp
from jax import lax
from jax.experimental import pallas as pl
from jax.experimental.pallas import tpu as pltpu

_UNROLL = 4


# ---------------------------------------------------------------------------
# Small helpers
# ---------------------------------------------------------------------------
def _round_up(x, m):
    return ((x + m - 1) // m) * m


def _buf_bytes(shape, dtype, n_buffers):
    return int(jnp.dtype(dtype).itemsize) * int(math.prod(shape)) * int(n_buffers)


def _chip_vmem_bytes():
    """Physical VMEM per core; conservative 64 MiB fallback (v7x-sized)."""
    try:
        v = int(pltpu.get_tpu_info().vmem_capacity_bytes)
        if v > 0:
            return v
    except Exception:
        pass
    return 64 * 1024 * 1024


def _vmem_limit(need_bytes, chip_vmem):
    lo = 16 * 1024 * 1024
    hi = max(lo, chip_vmem - 8 * 1024 * 1024)
    return int(min(max(need_bytes + 4 * 1024 * 1024, lo), hi))


@functools.lru_cache(maxsize=None)
def _buffered_one_supported():
    """Probe whether pipeline_mode=pl.Buffered(1) works on this JAX/Mosaic build."""
    try:
        spec = pl.BlockSpec((8, 128), lambda i: (0, 0), pipeline_mode=pl.Buffered(1))
    except TypeError:
        return False

    def k(x_ref, o_ref):
        o_ref[...] = x_ref[...] + 1.0

    try:
        out = pl.pallas_call(
            k,
            out_shape=jax.ShapeDtypeStruct((8, 128), jnp.float32),
            grid=(1,),
            in_specs=[spec],
            out_specs=pl.BlockSpec((8, 128), lambda i: (0, 0)),
        )(jnp.zeros((8, 128), jnp.float32))
        jax.block_until_ready(out)
        return True
    except Exception:
        return False


def _const_spec(shape, index_map):
    """BlockSpec for grid-invariant operands (weights/biases): single-buffered if possible."""
    if _buffered_one_supported():
        return pl.BlockSpec(shape, index_map, pipeline_mode=pl.Buffered(1))
    return pl.BlockSpec(shape, index_map)


def _weight_bufs():
    return 1 if _buffered_one_supported() else 2


# ---------------------------------------------------------------------------
# Per-chip tiling plan
# ---------------------------------------------------------------------------
def _plan(B, T, D, H, V, chip_vmem):
    B_pad = _round_up(max(B, 16), 16)          # 16 sublanes: full bf16 store tiles
    Hp = _round_up(H, 128)                     # lane-aligned gate slices
    Dp = _round_up(D, 128)
    Vp = _round_up(V, 128)
    budget = max(16 * 1024 * 1024, chip_vmem - 16 * 1024 * 1024)
    wb = _weight_bufs()

    # ---- time chunk for the serial recurrence (power of two, multiple of unroll) ----
    def rec_bytes(ct):
        gates = 2 * _buf_bytes((ct, B_pad, 4 * Hp), jnp.bfloat16, 2)
        outs = 2 * _buf_bytes((ct, B_pad, Hp), jnp.bfloat16, 2)
        wts = 2 * _buf_bytes((Hp, 4 * Hp), jnp.bfloat16, wb)
        scr = 4 * _buf_bytes((B_pad, Hp), jnp.float32, 1)
        return gates + outs + wts + scr

    ct = max(_UNROLL, min(1024, pl.next_power_of_2(max(T, _UNROLL))))
    while ct > _UNROLL and rec_bytes(ct) > budget:
        ct //= 2
    chunk_t = ct
    unroll = _UNROLL if chunk_t % _UNROLL == 0 else (2 if chunk_t % 2 == 0 else 1)

    # ---- row block for the grid-parallel matmul kernels (divides B_pad * chunk_t) ----
    def mm_bytes(rb):
        g4 = 4 * Hp
        gates_h = (4 * _buf_bytes((Hp, g4), jnp.bfloat16, wb)
                   + 2 * _buf_bytes((1, g4), jnp.float32, wb)
                   + 2 * _buf_bytes((rb, Hp), jnp.bfloat16, 2)
                   + 2 * _buf_bytes((rb, g4), jnp.bfloat16, 2))
        gates_0 = (2 * _buf_bytes((Dp, g4), jnp.bfloat16, wb)
                   + 2 * _buf_bytes((1, g4), jnp.float32, wb)
                   + _buf_bytes((rb, Dp), jnp.bfloat16, 2)
                   + 2 * _buf_bytes((rb, g4), jnp.bfloat16, 2))
        fc = (2 * _buf_bytes((Hp, Vp), jnp.bfloat16, wb)
              + _buf_bytes((1, Vp), jnp.float32, wb)
              + 2 * _buf_bytes((rb, Hp), jnp.bfloat16, 2)
              + _buf_bytes((rb, Vp), jnp.float32, 2))
        return max(gates_h, gates_0, fc)

    t_cap = max(1, min(chunk_t, 512 // B_pad))
    t_rows = 1
    while t_rows * 2 <= t_cap:
        t_rows *= 2                            # power-of-two divisor of chunk_t
    while t_rows > 1 and mm_bytes(B_pad * t_rows) > budget:
        t_rows //= 2
    row_blk = B_pad * t_rows

    T_pad = _round_up(max(T, 1), chunk_t)
    return dict(B_pad=B_pad, Hp=Hp, Dp=Dp, Vp=Vp, chunk_t=chunk_t, unroll=unroll,
                T_pad=T_pad, row_blk=row_blk)


# ---------------------------------------------------------------------------
# Kernels
# ---------------------------------------------------------------------------
def _gates_from_x_kernel(x_ref, wf_ref, wb_ref, bf_ref, bb_ref, gf_ref, gb_ref):
    """Layer-0 input projection for both directions; f32 accumulate, bf16 store."""
    x = x_ref[...]
    gf = jnp.dot(x, wf_ref[...], preferred_element_type=jnp.float32) + bf_ref[...]
    gb = jnp.dot(x, wb_ref[...], preferred_element_type=jnp.float32) + bb_ref[...]
    gf_ref[...] = gf.astype(gf_ref.dtype)
    gb_ref[...] = gb.astype(gb_ref.dtype)


def _gates_from_h_kernel(hf_ref, hb_ref, wff_ref, wfb_ref, wbf_ref, wbb_ref,
                         bf_ref, bb_ref, gf_ref, gb_ref):
    """Layer>0 input projection from (h_fwd, h_bwd) pair (no concat materialized)."""
    hf = hf_ref[...]
    hb = hb_ref[...]
    gf = (jnp.dot(hf, wff_ref[...], preferred_element_type=jnp.float32)
          + jnp.dot(hb, wfb_ref[...], preferred_element_type=jnp.float32)
          + bf_ref[...])
    gb = (jnp.dot(hf, wbf_ref[...], preferred_element_type=jnp.float32)
          + jnp.dot(hb, wbb_ref[...], preferred_element_type=jnp.float32)
          + bb_ref[...])
    gf_ref[...] = gf.astype(gf_ref.dtype)
    gb_ref[...] = gb.astype(gb_ref.dtype)


def _bilstm_step_kernel(gf_ref, gb_ref, whf_ref, whb_ref, of_ref, ob_ref,
                        hf_sc, cf_sc, hb_sc, cb_sc,
                        *, hidden, chunk_t, t_real, num_chunks, unroll):
    """Fused fwd+bwd LSTM recurrence over one time chunk (grid axis = chunks).

    gf_ref: [chunk_t, B, 4H] bf16 precomputed gates, fwd chunk i
    gb_ref: [chunk_t, B, 4H] bf16 precomputed gates, bwd chunk (num_chunks-1-i)
    wh*:    [H, 4H] bf16 recurrent weights (grid-invariant)
    o*_ref: [chunk_t, B, H] bf16 hidden outputs
    *_sc:   [B, H] f32 persistent recurrent state (read/written once per chunk)
    Gate layout: (i, f, o, g) -> one contiguous "sigmoid" slice + one tanh slice.
    """
    H = hidden
    i = pl.program_id(0)

    @pl.when(i == 0)
    def _():
        hf_sc[...] = jnp.zeros_like(hf_sc)
        cf_sc[...] = jnp.zeros_like(cf_sc)
        hb_sc[...] = jnp.zeros_like(hb_sc)
        cb_sc[...] = jnp.zeros_like(cb_sc)

    w_f = whf_ref[...]
    w_b = whb_ref[...]

    def cell(gates_pre, h, c, w_hh):
        g_all = (jnp.dot(h.astype(jnp.bfloat16), w_hh,
                         preferred_element_type=jnp.float32)
                 + gates_pre.astype(jnp.float32))
        # sigmoid(x) = 0.5*(1 + tanh(0.5*x)): moves the exp+recip off the EUP slot.
        sig = 0.5 * (1.0 + jnp.tanh(0.5 * g_all[:, :3 * H]))
        g_t = jnp.tanh(g_all[:, 3 * H:])
        i_g = sig[:, 0 * H:1 * H]
        f_g = sig[:, 1 * H:2 * H]
        o_g = sig[:, 2 * H:3 * H]
        c_new = f_g * c + i_g * g_t
        h_new = o_g * jnp.tanh(c_new)
        return h_new, c_new

    def run_chunk(masked):
        def step(t, carry):
            hf, cf, hb, cb = carry
            # ---- forward direction: local time t of chunk i (global t grows) ----
            hf, cf = cell(gf_ref[t], hf, cf, w_f)
            of_ref[t] = hf.astype(of_ref.dtype)

            # ---- backward direction: reversed local time of chunk (num_chunks-1-i) ----
            tr = chunk_t - 1 - t
            hb_new, cb_new = cell(gb_ref[tr], hb, cb, w_b)
            if masked:
                g_time = (num_chunks - 1 - i) * chunk_t + tr
                valid = g_time < t_real
                hb_new = jnp.where(valid, hb_new, hb)   # padded frames don't touch state
                cb_new = jnp.where(valid, cb_new, cb)
            ob_ref[tr] = hb_new.astype(ob_ref.dtype)
            return hf, cf, hb_new, cb_new

        carry0 = (hf_sc[...], cf_sc[...], hb_sc[...], cb_sc[...])
        hf, cf, hb, cb = lax.fori_loop(0, chunk_t, step, carry0, unroll=unroll)
        hf_sc[...] = hf
        cf_sc[...] = cf
        hb_sc[...] = hb
        cb_sc[...] = cb

    # Only grid steps i < n_masked can contain padded frames for the bwd stream.
    n_masked = num_chunks - (t_real // chunk_t)
    if n_masked <= 0:
        run_chunk(masked=False)
    else:
        @pl.when(i < n_masked)
        def _():
            run_chunk(masked=True)

        @pl.when(i >= n_masked)
        def _():
            run_chunk(masked=False)


def _fc_logsoftmax_kernel(hf_ref, hb_ref, wf_ref, wb_ref, b_ref, out_ref):
    """Linear (split over fwd/bwd halves) + log_softmax; vocab padded to 128 lanes, f32 math."""
    logits = (jnp.dot(hf_ref[...], wf_ref[...], preferred_element_type=jnp.float32)
              + jnp.dot(hb_ref[...], wb_ref[...], preferred_element_type=jnp.float32)
              + b_ref[...])
    m = jnp.max(logits, axis=-1, keepdims=True)
    z = logits - m
    lse = jnp.log(jnp.sum(jnp.exp(z), axis=-1, keepdims=True))
    out_ref[...] = z - lse


# ---------------------------------------------------------------------------
# pallas_call wrappers (per-call VMEM limits derived from actual buffer sizes)
# ---------------------------------------------------------------------------
def _run_gates_layer0(x_flat, wf, wb, bf, bb, row_blk, chip_vmem):
    N, D = x_flat.shape
    G = wf.shape[1]
    wbufs = _weight_bufs()
    need = (_buf_bytes((row_blk, D), jnp.bfloat16, 2)
            + 2 * _buf_bytes((D, G), jnp.bfloat16, wbufs)
            + 2 * _buf_bytes((1, G), jnp.float32, wbufs)
            + 2 * _buf_bytes((row_blk, G), jnp.bfloat16, 2))
    return pl.pallas_call(
        _gates_from_x_kernel,
        out_shape=(jax.ShapeDtypeStruct((N, G), jnp.bfloat16),
                   jax.ShapeDtypeStruct((N, G), jnp.bfloat16)),
        grid_spec=pltpu.PrefetchScalarGridSpec(
            num_scalar_prefetch=0, grid=(N // row_blk,),
            in_specs=[
                pl.BlockSpec((row_blk, D), lambda r: (r, 0)),
                _const_spec((D, G), lambda r: (0, 0)),
                _const_spec((D, G), lambda r: (0, 0)),
                _const_spec((1, G), lambda r: (0, 0)),
                _const_spec((1, G), lambda r: (0, 0)),
            ],
            out_specs=[
                pl.BlockSpec((row_blk, G), lambda r: (r, 0)),
                pl.BlockSpec((row_blk, G), lambda r: (r, 0)),
            ],
        ),
        compiler_params=pltpu.CompilerParams(
            dimension_semantics=("parallel",),
            vmem_limit_bytes=_vmem_limit(need, chip_vmem)),
    )(x_flat, wf, wb, bf, bb)


def _run_gates_layer_h(hf_flat, hb_flat, wff, wfb, wbf, wbb, bf, bb, row_blk, chip_vmem):
    N, H = hf_flat.shape
    G = wff.shape[1]
    wbufs = _weight_bufs()
    need = (2 * _buf_bytes((row_blk, H), jnp.bfloat16, 2)
            + 4 * _buf_bytes((H, G), jnp.bfloat16, wbufs)
            + 2 * _buf_bytes((1, G), jnp.float32, wbufs)
            + 2 * _buf_bytes((row_blk, G), jnp.bfloat16, 2))
    return pl.pallas_call(
        _gates_from_h_kernel,
        out_shape=(jax.ShapeDtypeStruct((N, G), jnp.bfloat16),
                   jax.ShapeDtypeStruct((N, G), jnp.bfloat16)),
        grid_spec=pltpu.PrefetchScalarGridSpec(
            num_scalar_prefetch=0, grid=(N // row_blk,),
            in_specs=[
                pl.BlockSpec((row_blk, H), lambda r: (r, 0)),
                pl.BlockSpec((row_blk, H), lambda r: (r, 0)),
                _const_spec((H, G), lambda r: (0, 0)),
                _const_spec((H, G), lambda r: (0, 0)),
                _const_spec((H, G), lambda r: (0, 0)),
                _const_spec((H, G), lambda r: (0, 0)),
                _const_spec((1, G), lambda r: (0, 0)),
                _const_spec((1, G), lambda r: (0, 0)),
            ],
            out_specs=[
                pl.BlockSpec((row_blk, G), lambda r: (r, 0)),
                pl.BlockSpec((row_blk, G), lambda r: (r, 0)),
            ],
        ),
        compiler_params=pltpu.CompilerParams(
            dimension_semantics=("parallel",),
            vmem_limit_bytes=_vmem_limit(need, chip_vmem)),
    )(hf_flat, hb_flat, wff, wfb, wbf, wbb, bf, bb)


def _run_bilstm_layer(gates_f, gates_b, whh_f, whh_b, *, hidden, chunk_t, t_real,
                      unroll, chip_vmem):
    T_pad, B_pad, G = gates_f.shape
    num_chunks = T_pad // chunk_t
    wbufs = _weight_bufs()
    need = (2 * _buf_bytes((chunk_t, B_pad, G), jnp.bfloat16, 2)
            + 2 * _buf_bytes((chunk_t, B_pad, hidden), jnp.bfloat16, 2)
            + 2 * _buf_bytes((hidden, G), jnp.bfloat16, wbufs)
            + 4 * _buf_bytes((B_pad, hidden), jnp.float32, 1))
    kernel = functools.partial(_bilstm_step_kernel, hidden=hidden,
                               chunk_t=chunk_t, t_real=t_real,
                               num_chunks=num_chunks, unroll=unroll)
    return pl.pallas_call(
        kernel,
        out_shape=(jax.ShapeDtypeStruct((T_pad, B_pad, hidden), jnp.bfloat16),
                   jax.ShapeDtypeStruct((T_pad, B_pad, hidden), jnp.bfloat16)),
        grid_spec=pltpu.PrefetchScalarGridSpec(
            num_scalar_prefetch=0, grid=(num_chunks,),
            in_specs=[
                pl.BlockSpec((chunk_t, B_pad, G), lambda i: (i, 0, 0)),
                pl.BlockSpec((chunk_t, B_pad, G),
                             lambda i: (num_chunks - 1 - i, 0, 0)),
                _const_spec((hidden, G), lambda i: (0, 0)),
                _const_spec((hidden, G), lambda i: (0, 0)),
            ],
            out_specs=[
                pl.BlockSpec((chunk_t, B_pad, hidden), lambda i: (i, 0, 0)),
                pl.BlockSpec((chunk_t, B_pad, hidden),
                             lambda i: (num_chunks - 1 - i, 0, 0)),
            ],
            scratch_shapes=[pltpu.VMEM((B_pad, hidden), jnp.float32)] * 4,
        ),
        compiler_params=pltpu.CompilerParams(
            dimension_semantics=("arbitrary",),
            vmem_limit_bytes=_vmem_limit(need, chip_vmem)),
    )(gates_f, gates_b, whh_f, whh_b)


def _run_fc_logsoftmax(hf_flat, hb_flat, fc_wf, fc_wb, fc_b, row_blk, chip_vmem):
    N, H = hf_flat.shape
    Vp = fc_wf.shape[1]
    wbufs = _weight_bufs()
    need = (2 * _buf_bytes((row_blk, H), jnp.bfloat16, 2)
            + 2 * _buf_bytes((H, Vp), jnp.bfloat16, wbufs)
            + _buf_bytes((1, Vp), jnp.float32, wbufs)
            + _buf_bytes((row_blk, Vp), jnp.float32, 2))
    return pl.pallas_call(
        _fc_logsoftmax_kernel,
        out_shape=jax.ShapeDtypeStruct((N, Vp), jnp.float32),
        grid_spec=pltpu.PrefetchScalarGridSpec(
            num_scalar_prefetch=0, grid=(N // row_blk,),
            in_specs=[
                pl.BlockSpec((row_blk, H), lambda r: (r, 0)),
                pl.BlockSpec((row_blk, H), lambda r: (r, 0)),
                _const_spec((H, Vp), lambda r: (0, 0)),
                _const_spec((H, Vp), lambda r: (0, 0)),
                _const_spec((1, Vp), lambda r: (0, 0)),
            ],
            out_specs=pl.BlockSpec((row_blk, Vp), lambda r: (r, 0)),
        ),
        compiler_params=pltpu.CompilerParams(
            dimension_semantics=("parallel",),
            vmem_limit_bytes=_vmem_limit(need, chip_vmem)),
    )(hf_flat, hb_flat, fc_wf, fc_wb, fc_b)


# ---------------------------------------------------------------------------
# Parameters: raw f32 (PyTorch-style U(-1/sqrt(H), 1/sqrt(H)); gate layout (i,f,o,g)),
# then a kernel-layout preparation step (lane padding + bf16 casts).
# ---------------------------------------------------------------------------
def init_params(key, input_dim, hidden_dim, num_layers, num_tokens):
    H = hidden_dim
    k = 1.0 / float(H) ** 0.5
    layers = []
    for l in range(num_layers):
        d_in = input_dim if l == 0 else 2 * H
        layer = {}
        for direction in ("fwd", "bwd"):
            key, k1, k2, k3, k4 = jax.random.split(key, 5)
            layer[direction] = {
                "w_ih": jax.random.uniform(k1, (d_in, 4 * H), jnp.float32, -k, k),
                "w_hh": jax.random.uniform(k2, (H, 4 * H), jnp.float32, -k, k),
                "b": (jax.random.uniform(k3, (4 * H,), jnp.float32, -k, k)
                      + jax.random.uniform(k4, (4 * H,), jnp.float32, -k, k)),
            }
        layers.append(layer)
    k_fc = 1.0 / float(2 * H) ** 0.5
    key, kw, kb = jax.random.split(key, 3)
    return {
        "lstm": layers,
        "fc_w": jax.random.uniform(kw, (2 * H, num_tokens), jnp.float32, -k_fc, k_fc),
        "fc_b": jax.random.uniform(kb, (num_tokens,), jnp.float32, -k_fc, k_fc),
        "input_dim": input_dim, "hidden_dim": hidden_dim, "num_tokens": num_tokens,
    }


def _pad_gate_cols(w, H, Hp):
    """[..., 4H] -> [..., 4Hp] keeping the (i,f,o,g) blocks lane-aligned (pads are 0)."""
    lead = w.shape[:-1]
    w4 = w.reshape(lead + (4, H))
    out = jnp.zeros(lead + (4, Hp), w.dtype).at[..., :H].set(w4)
    return out.reshape(lead + (4 * Hp,))


def _pad_rows(w, rows_to):
    return jnp.pad(w, ((0, rows_to - w.shape[0]), (0, 0)))


def prepare_kernel_params(raw, *, Hp, Dp, Vp):
    H, V = raw["hidden_dim"], raw["num_tokens"]
    layers = []
    for l, layer in enumerate(raw["lstm"]):
        out_layer = {}
        for direction in ("fwd", "bwd"):
            p = layer[direction]
            entry = {
                "w_hh": _pad_rows(_pad_gate_cols(p["w_hh"], H, Hp), Hp).astype(jnp.bfloat16),
                "b": _pad_gate_cols(p["b"].reshape(1, 4 * H), H, Hp),   # f32
            }
            if l == 0:
                entry["w_ih"] = _pad_rows(_pad_gate_cols(p["w_ih"], H, Hp),
                                          Dp).astype(jnp.bfloat16)
            else:
                w = _pad_gate_cols(p["w_ih"], H, Hp)
                entry["w_ih_hf"] = _pad_rows(w[:H], Hp).astype(jnp.bfloat16)
                entry["w_ih_hb"] = _pad_rows(w[H:2 * H], Hp).astype(jnp.bfloat16)
            out_layer[direction] = entry
        layers.append(out_layer)
    fc_w = jnp.zeros((2 * H, Vp), jnp.float32).at[:, :V].set(raw["fc_w"])
    fc_b = jnp.full((1, Vp), -1e30, jnp.float32).at[0, :V].set(raw["fc_b"])
    return {
        "lstm": layers,
        "fc_wf": _pad_rows(fc_w[:H], Hp).astype(jnp.bfloat16),
        "fc_wb": _pad_rows(fc_w[H:], Hp).astype(jnp.bfloat16),
        "fc_b": fc_b,   # log_softmax stays f32 so -1e30 pads are safe
    }


# ---------------------------------------------------------------------------
# Forward pass (mirrors AcousticModel.forward; lengths pass through unchanged).
# ---------------------------------------------------------------------------
def acoustic_model_forward(spectrogram, spectrogram_length, raw_params, hidden_dim):
    """spectrogram: [B, T, input_dim] -> {'log_probs': [B, T, V], 'log_probs_length': [B]}"""
    B, T, D = spectrogram.shape
    H = hidden_dim
    V = raw_params["num_tokens"]

    chip_vmem = _chip_vmem_bytes()
    plan = _plan(B, T, D, H, V, chip_vmem)
    B_pad, Hp, Dp, Vp = plan["B_pad"], plan["Hp"], plan["Dp"], plan["Vp"]
    chunk_t, T_pad = plan["chunk_t"], plan["T_pad"]
    row_blk, unroll = plan["row_blk"], plan["unroll"]
    N = T_pad * B_pad

    params = prepare_kernel_params(raw_params, Hp=Hp, Dp=Dp, Vp=Vp)

    # time-major, padded to (T_pad, B_pad, Dp) — padded hidden lanes stay exactly zero
    x = jnp.transpose(spectrogram.astype(jnp.bfloat16), (1, 0, 2))
    x = jnp.pad(x, ((0, T_pad - T), (0, B_pad - B), (0, Dp - D)))
    x_flat = x.reshape(N, Dp)

    h_f = h_b = None
    for li, layer in enumerate(params["lstm"]):
        fwd, bwd = layer["fwd"], layer["bwd"]
        if li == 0:
            gf, gb = _run_gates_layer0(x_flat, fwd["w_ih"], bwd["w_ih"],
                                       fwd["b"], bwd["b"], row_blk, chip_vmem)
        else:
            gf, gb = _run_gates_layer_h(h_f.reshape(N, Hp), h_b.reshape(N, Hp),
                                        fwd["w_ih_hf"], fwd["w_ih_hb"],
                                        bwd["w_ih_hf"], bwd["w_ih_hb"],
                                        fwd["b"], bwd["b"], row_blk, chip_vmem)
        gf = gf.reshape(T_pad, B_pad, 4 * Hp)
        gb = gb.reshape(T_pad, B_pad, 4 * Hp)
        h_f, h_b = _run_bilstm_layer(gf, gb, fwd["w_hh"], bwd["w_hh"],
                                     hidden=Hp, chunk_t=chunk_t, t_real=T,
                                     unroll=unroll, chip_vmem=chip_vmem)

    log_probs_pad = _run_fc_logsoftmax(h_f.reshape(N, Hp), h_b.reshape(N, Hp),
                                       params["fc_wf"], params["fc_wb"],
                                       params["fc_b"], row_blk, chip_vmem)
    log_probs = log_probs_pad.reshape(T_pad, B_pad, Vp)[:T, :B, :V]
    log_probs = jnp.transpose(log_probs, (1, 0, 2))                  # [B, T, V]
    return {"log_probs": log_probs, "log_probs_length": spectrogram_length}


# ---------------------------------------------------------------------------
# Pure-JAX reference (f32 scan) for a correctness check against the kernels.
# ---------------------------------------------------------------------------
def _reference_forward(spectrogram, raw, hidden_dim):
    H = hidden_dim
    x = spectrogram.astype(jnp.bfloat16).astype(jnp.float32)   # match layer-0 quantization

    def run_dir(x_seq, w_ih, w_hh, b, reverse):
        w_ih = w_ih.astype(jnp.bfloat16).astype(jnp.float32)
        w_hh = w_hh.astype(jnp.bfloat16).astype(jnp.float32)

        def step(carry, x_t):
            h, c = carry
            gates = x_t @ w_ih + h @ w_hh + b
            i_g = jax.nn.sigmoid(gates[:, 0 * H:1 * H])
            f_g = jax.nn.sigmoid(gates[:, 1 * H:2 * H])
            o_g = jax.nn.sigmoid(gates[:, 2 * H:3 * H])
            g_g = jnp.tanh(gates[:, 3 * H:])
            c = f_g * c + i_g * g_g
            h = o_g * jnp.tanh(c)
            return (h, c), h

        Bb = x_seq.shape[1]
        init = (jnp.zeros((Bb, H), jnp.float32), jnp.zeros((Bb, H), jnp.float32))
        _, hs = lax.scan(step, init, x_seq, reverse=reverse)
        return hs

    xt = jnp.transpose(x, (1, 0, 2))
    for layer in raw["lstm"]:
        f, bw = layer["fwd"], layer["bwd"]
        hf = run_dir(xt, f["w_ih"], f["w_hh"], f["b"], reverse=False)
        hb = run_dir(xt, bw["w_ih"], bw["w_hh"], bw["b"], reverse=True)
        xt = jnp.concatenate([hf, hb], axis=-1)

    fc_w = raw["fc_w"].astype(jnp.bfloat16).astype(jnp.float32)
    logits = xt @ fc_w + raw["fc_b"]
    log_probs = jax.nn.log_softmax(logits, axis=-1)
    return jnp.transpose(log_probs, (1, 0, 2))


# ---------------------------------------------------------------------------
if __name__ == "__main__":
    B, T = 2, 8
    input_dim, hidden_dim, num_layers, num_tokens = 16, 32, 2, 28

    key = jax.random.PRNGKey(0)
    key, k_x = jax.random.split(key)
    spectrogram = jax.random.normal(k_x, (B, T, input_dim), jnp.float32)
    spectrogram_length = jnp.array([T, T - 2], dtype=jnp.int32)

    params = init_params(jax.random.PRNGKey(42), input_dim, hidden_dim,
                         num_layers, num_tokens)

    out = acoustic_model_forward(spectrogram, spectrogram_length, params, hidden_dim)
    log_probs = jax.block_until_ready(out["log_probs"])
    lengths = jax.block_until_ready(out["log_probs_length"])

    assert log_probs.shape == (B, T, num_tokens)
    assert lengths.shape == (B,)

    # log_softmax rows must sum to 1 in prob space
    probs_sum = jnp.exp(log_probs).sum(axis=-1)
    assert bool(jnp.all(jnp.abs(probs_sum - 1.0) < 1e-3))

    # compare against a pure-JAX f32 reference (bf16 weight/gate rounding -> loose tol)
    ref = _reference_forward(spectrogram, params, hidden_dim)
    max_err = float(jnp.max(jnp.abs(log_probs - ref)))
    assert max_err < 0.1, f"max abs err vs reference: {max_err}"

    print("KERNEL_OK")
</pallas_src>

<mosaic_0001>
module attributes {stable_mosaic.version = 11 : i64} {
  func.func @k(%arg0: i32, %arg1: memref<8x128xf32, #tpu.memory_space<vmem>>, %arg2: memref<8x128xf32, #tpu.memory_space<vmem>>) attributes {dimension_semantics = [#tpu.dimension_semantics<arbitrary>], iteration_bounds = array<i64: 1>, scalar_prefetch = 0 : i64, scratch_operands = 0 : i64, tpu.core_type = #tpu.core_type<tc>, window_params = [{pipeline_mode = #tpu.pipeline_mode<synchronous>, transform_indices = @transform_0, window_bounds = array<i64: 8, 128>}, {pipeline_mode = #tpu.pipeline_mode<synchronous>, transform_indices = @transform_1, window_bounds = array<i64: 8, 128>}]} {
    %c0 = arith.constant 0 : index
    %c0_0 = arith.constant 0 : index
    %0 = vector.load %arg1[%c0, %c0_0] : memref<8x128xf32, #tpu.memory_space<vmem>>, vector<8x128xf32>
    %cst = arith.constant 1.000000e+00 : f32
    %1 = vector.broadcast %cst : f32 to vector<8x128xf32>
    %2 = arith.addf %0, %1 : vector<8x128xf32>
    %c0_1 = arith.constant 0 : index
    %c0_2 = arith.constant 0 : index
    %3 = vector.load %arg2[%c0_1, %c0_2] : memref<8x128xf32, #tpu.memory_space<vmem>>, vector<8x128xf32>
    tpu.vector_store %arg2[%c0_1, %c0_2], %2 {strides = array<i32>} : memref<8x128xf32, #tpu.memory_space<vmem>>, vector<8x128xf32>,
    return
  }
  func.func @transform_0(%arg0: i32) -> (i32, i32) {
    %c0_i32 = arith.constant 0 : i32
    %c0_i32_0 = arith.constant 0 : i32
    %c0_i32_1 = arith.constant 0 : i32
    return %c0_i32, %c0_i32_0 : i32, i32
  }
  func.func @transform_1(%arg0: i32) -> (i32, i32) {
    %c0_i32 = arith.constant 0 : i32
    %c0_i32_0 = arith.constant 0 : i32
    %c0_i32_1 = arith.constant 0 : i32
    return %c0_i32, %c0_i32_0 : i32, i32
  }
}

module attributes {stable_mosaic.version = 11 : i64} {
  func.func @_gates_from_x_kernel(%arg0: i32, %arg1: memref<128x128xbf16, #tpu.memory_space<vmem>>, %arg2: memref<128x512xbf16, #tpu.memory_space<vmem>>, %arg3: memref<128x512xbf16, #tpu.memory_space<vmem>>, %arg4: memref<1x512xf32, #tpu.memory_space<vmem>>, %arg5: memref<1x512xf32, #tpu.memory_space<vmem>>, %arg6: memref<128x512xbf16, #tpu.memory_space<vmem>>, %arg7: memref<128x512xbf16, #tpu.memory_space<vmem>>) attributes {dimension_semantics = [#tpu.dimension_semantics<parallel>], iteration_bounds = array<i64: 1>, scalar_prefetch = 0 : i64, scratch_operands = 0 : i64, tpu.core_type = #tpu.core_type<tc>, window_params = [{transform_indices = @transform_0, window_bounds = array<i64: 128, 128>}, {pipeline_mode = #tpu.pipeline_mode<synchronous>, transform_indices = @transform_1, window_bounds = array<i64: 128, 512>}, {pipeline_mode = #tpu.pipeline_mode<synchronous>, transform_indices = @transform_2, window_bounds = array<i64: 128, 512>}, {pipeline_mode = #tpu.pipeline_mode<synchronous>, transform_indices = @transform_3, window_bounds = array<i64: 1, 512>}, {pipeline_mode = #tpu.pipeline_mode<synchronous>, transform_indices = @transform_4, window_bounds = array<i64: 1, 512>}, {transform_indices = @transform_5, window_bounds = array<i64: 128, 512>}, {transform_indices = @transform_6, window_bounds = array<i64: 128, 512>}]} {
    %c0 = arith.constant 0 : index
    %c0_0 = arith.constant 0 : index
    %0 = vector.load %arg1[%c0, %c0_0] : memref<128x128xbf16, #tpu.memory_space<vmem>>, vector<128x128xbf16>
    %c0_1 = arith.constant 0 : index
    %c0_2 = arith.constant 0 : index
    %1 = vector.load %arg2[%c0_1, %c0_2] : memref<128x512xbf16, #tpu.memory_space<vmem>>, vector<128x512xbf16>
    %cst = arith.constant dense<0.000000e+00> : vector<128x512xf32>
    %2 = tpu.matmul %0, %1, %cst {dimension_numbers = #tpu.dot_dimension_numbers<[1], [0], [0], [1], [0, 0, 1, 1], [], []>} : vector<128x128xbf16>, vector<128x512xbf16>, vector<128x512xf32> -> vector<128x512xf32>
    %c0_3 = arith.constant 0 : index
    %c0_4 = arith.constant 0 : index
    %3 = vector.load %arg4[%c0_3, %c0_4] : memref<1x512xf32, #tpu.memory_space<vmem>>, vector<1x512xf32>
    %4 = vector.broadcast %3 : vector<1x512xf32> to vector<128x512xf32>
    %5 = arith.addf %2, %4 : vector<128x512xf32>
    %c0_5 = arith.constant 0 : index
    %c0_6 = arith.constant 0 : index
    %6 = vector.load %arg3[%c0_5, %c0_6] : memref<128x512xbf16, #tpu.memory_space<vmem>>, vector<128x512xbf16>
    %cst_7 = arith.constant dense<0.000000e+00> : vector<128x512xf32>
    %7 = tpu.matmul %0, %6, %cst_7 {dimension_numbers = #tpu.dot_dimension_numbers<[1], [0], [0], [1], [0, 0, 1, 1], [], []>} : vector<128x128xbf16>, vector<128x512xbf16>, vector<128x512xf32> -> vector<128x512xf32>
    %c0_8 = arith.constant 0 : index
    %c0_9 = arith.constant 0 : index
    %8 = vector.load %arg5[%c0_8, %c0_9] : memref<1x512xf32, #tpu.memory_space<vmem>>, vector<1x512xf32>
    %9 = vector.broadcast %8 : vector<1x512xf32> to vector<128x512xf32>
    %10 = arith.addf %7, %9 : vector<128x512xf32>
    %11 = arith.truncf %5 : vector<128x512xf32> to vector<128x512xbf16>
    %c0_10 = arith.constant 0 : index
    %c0_11 = arith.constant 0 : index
    %12 = vector.load %arg6[%c0_10, %c0_11] : memref<128x512xbf16, #tpu.memory_space<vmem>>, vector<128x512xbf16>
    tpu.vector_store %arg6[%c0_10, %c0_11], %11 {strides = array<i32>} : memref<128x512xbf16, #tpu.memory_space<vmem>>, vector<128x512xbf16>,
    %13 = arith.truncf %10 : vector<128x512xf32> to vector<128x512xbf16>
    %c0_12 = arith.constant 0 : index
    %c0_13 = arith.constant 0 : index
    %14 = vector.load %arg7[%c0_12, %c0_13] : memref<128x512xbf16, #tpu.memory_space<vmem>>, vector<128x512xbf16>
    tpu.vector_store %arg7[%c0_12, %c0_13], %13 {strides = array<i32>} : memref<128x512xbf16, #tpu.memory_space<vmem>>, vector<128x512xbf16>,
    return
  }
  func.func @transform_0(%arg0: i32) -> (i32, i32) {
    %c0_i32 = arith.constant 0 : i32
    %c0_i32_0 = arith.constant 0 : i32
    return %arg0, %c0_i32 : i32, i32
  }
  func.func @transform_1(%arg0: i32) -> (i32, i32) {
    %c0_i32 = arith.constant 0 : i32
    %c0_i32_0 = arith.constant 0 : i32
    %c0_i32_1 = arith.constant 0 : i32
    return %c0_i32, %c0_i32_0 : i32, i32
  }
  func.func @transform_2(%arg0: i32) -> (i32, i32) {
    %c0_i32 = arith.constant 0 : i32
    %c0_i32_0 = arith.constant 0 : i32
    %c0_i32_1 = arith.constant 0 : i32
    return %c0_i32, %c0_i32_0 : i32, i32
  }
  func.func @transform_3(%arg0: i32) -> (i32, i32) {
    %c0_i32 = arith.constant 0 : i32
    %c0_i32_0 = arith.constant 0 : i32
    %c0_i32_1 = arith.constant 0 : i32
    return %c0_i32, %c0_i32_0 : i32, i32
  }
  func.func @transform_4(%arg0: i32) -> (i32, i32) {
    %c0_i32 = arith.constant 0 : i32
    %c0_i32_0 = arith.constant 0 : i32
    %c0_i32_1 = arith.constant 0 : i32
    return %c0_i32, %c0_i32_0 : i32, i32
  }
  func.func @transform_5(%arg0: i32) -> (i32, i32) {
    %c0_i32 = arith.constant 0 : i32
    %c0_i32_0 = arith.constant 0 : i32
    return %arg0, %c0_i32 : i32, i32
  }
  func.func @transform_6(%arg0: i32) -> (i32, i32) {
    %c0_i32 = arith.constant 0 : i32
    %c0_i32_0 = arith.constant 0 : i32
    return %arg0, %c0_i32 : i32, i32
  }
}

</mosaic_0001>

<bundles_post_ra>
// kernel: tpu_custom_call.1
= control target key start
LH: loop header
LB: loop body
LE: loop exit
PB: predicated region body
PF: predicated region fallthrough
CT: control target
= control target key end

     0   :  { %6 = vsyncpa [#allocation3], 0  ;;  %s125_s0 = inlined_call_operand.hbm [shape: f32[8,128], index: 0, kind: input, shape index: {}]   ;;  %s126_s1 = inlined_call_operand.hbm [shape: f32[8,128], index: 1, kind: output, shape index: {}]  }
   0x1   :  { %7 = vsyncpa [#allocation4], 0  ;;  %s89_s6 = smov [#allocation2]   ;;  %s41_s10 = scalar_lea.hbm %s125_s0, 128 }
   0x2   :  { %s14_s7 = sshll.u32 %s89_s6, 4  ;;  %p42_p0 = scmp.ne.s32.totalorder %s125_s0, %s41_s10  ;;  %s15_s7 = int_to_ptr.vmem [resolvable:$true] %s14_s7 }
   0x3   :  { %p45_p1 = scmp.lt.u32.totalorder %s41_s10, %s125_s0 }
   0x5   :  { %p47_p2 = pnand %p45_p1, %p42_p0 }
   0x7   :  { %50 = shalt.err (!%p47_p2)
}
   0x8   :  { %s51_s15 = scalar_lea.vmem %s15_s7, 128  ;;  %p56_p4 = scmp.lt.s32.totalorder %s15_s7, %s15_s7 }
   0x9   :  { %p52_p3 = scmp.ne.s32.totalorder %s15_s7, %s51_s15  ;;  %p57_p5 = scmp.lt.s32.totalorder %s51_s15, %s51_s15 }
   0xb   :  { %p58_p6 = por %p57_p5, %p56_p4 }
   0xd   :  { %p59_p7 = pnand %p58_p6, %p52_p3 }
   0xf   :  { %62 = shalt.err (!%p59_p7)
}
  0x10   :  { %17 = dma.hbm_to_vmem [thread:$0]  %s125_s0, 128, %s15_s7, [#allocation3]  }
  0x11   :  { %85 = dma.done.wait [#allocation3], 128  }
  0x12   :  { %86 = vsyncadd [#allocation3], 4294967168  ;;  %s90_s18 = smov [#allocation5]   ;;  %v21_v0 = vld [vmem:[#allocation2] sm:$0xff] }
  0x13   :  { %s30_s19 = sshll.u32 %s90_s18, 4  ;;  %v22_v1 = vadd.f32 1.0, %v21_v0  ;;  %s31_s19 = int_to_ptr.vmem [resolvable:$true] %s30_s19 }
  0x14   :  { %s63_s20 = scalar_lea.vmem %s31_s19, 128  ;;  %p68_p9 = scmp.lt.s32.totalorder %s31_s19, %s31_s19 }
  0x15   :  { %23 = vst [vmem:[#allocation5] sm:$0xff] %v22_v1  ;;  %p64_p8 = scmp.ne.s32.totalorder %s31_s19, %s63_s20  ;;  %p69_p10 = scmp.lt.s32.totalorder %s63_s20, %s63_s20 }
  0x17   :  { %p70_p11 = por %p69_p10, %p68_p9 }
  0x19   :  { %p71_p12 = pnand %p70_p11, %p64_p8 }
  0x1b   :  { %74 = shalt.err (!%p71_p12)
}
  0x1c   :  { %s75_s23 = scalar_lea.hbm %s126_s1, 128 }
  0x1d   :  { %p76_p13 = scmp.ne.s32.totalorder %s126_s1, %s75_s23  ;;  %p79_p0 = scmp.lt.u32.totalorder %s75_s23, %s126_s1 }
  0x1f   :  { %p81_p1 = pnand %p79_p0, %p76_p13 }
  0x21   :  { %84 = shalt.err (!%p81_p1)
}
  0x22   :  { %33 = dma.vmem_to_hbm [thread:$0]  %s31_s19, 128, %s126_s1, [#allocation4]  }
  0x23   :  { %87 = dma.done.wait [#allocation4], 128  }
  0x24   :  { %88 = vsyncadd [#allocation4], 4294967168 }
  0x25   :  { %37 = vsyncpa [#allocation3], 1 }
  0x26   :  { %38 = vsyncpa [#allocation4], 1 }

// kernel: tpu_custom_call.1
= control target key start
LH: loop header
LB: loop body
LE: loop exit
PB: predicated region body
PF: predicated region fallthrough
CT: control target
= control target key end

     0   :  { %12 = vsyncpa [#allocation3], 0  ;;  %s2263_s0 = inlined_call_operand.hbm [shape: bf16[128,128], index: 0, kind: input, shape index: {}]   ;;  %s2264_s1 = inlined_call_operand.hbm [shape: bf16[128,512], index: 1, kind: input, shape index: {}]   ;;  %s2265_s2 = inlined_call_operand.hbm [shape: bf16[128,512], index: 2, kind: input, shape index: {}]   ;;  %s2266_s3 = inlined_call_operand.vmem [shape: f32[1,512], index: 3, kind: input, shape index: {}]   ;;  %s2267_s4 = inlined_call_operand.vmem [shape: f32[1,512], index: 4, kind: input, shape index: {}]   ;;  %s2268_s5 = inlined_call_operand.hbm [shape: bf16[128,512], index: 5, kind: output, shape index: {0}]   ;;  %s2269_s6 = inlined_call_operand.hbm [shape: bf16[128,512], index: 6, kind: output, shape index: {1}]  }
   0x1   :  { %13 = vsyncpa [#allocation6], 0 }
   0x2   :  { %14 = vsyncpa [#allocation4], 0 }
   0x3   :  { %15 = vsyncpa [#allocation10], 0  ;;  %s1924_s21 = smov [#allocation5]   ;;  %s1806_s25 = scalar_lea.hbm %s2264_s1, 4096 }
   0x4   :  { %s33_s22 = sshll.u32 %s1924_s21, 4  ;;  %p1807_p0 = scmp.ne.s32.totalorder %s2264_s1, %s1806_s25  ;;  %s34_s22 = int_to_ptr.vmem [resolvable:$true] %s33_s22 }
   0x5   :  { %p1810_p1 = scmp.lt.u32.totalorder %s1806_s25, %s2264_s1 }
   0x7   :  { %p1812_p2 = pnand %p1810_p1, %p1807_p0 }
   0x9   :  { %1815 = shalt.err (!%p1812_p2)
}
   0xa   :  { %s1816_s30 = scalar_lea.vmem %s34_s22, 4096  ;;  %p1821_p4 = scmp.lt.s32.totalorder %s34_s22, %s34_s22 }
   0xb   :  { %p1817_p3 = scmp.ne.s32.totalorder %s34_s22, %s1816_s30  ;;  %p1822_p5 = scmp.lt.s32.totalorder %s1816_s30, %s1816_s30 }
   0xd   :  { %p1823_p6 = por %p1822_p5, %p1821_p4 }
   0xf   :  { %p1824_p7 = pnand %p1823_p6, %p1817_p3 }
  0x11   :  { %1827 = shalt.err (!%p1824_p7)
}
  0x12   :  { %s1925_s7 = smov 256   ;;  %s1926_s8 = smov 16  }
  0x13   :  { %39 = dma.hbm_to_vmem [thread:$0]  %s2264_s1, 4096, %s34_s22, [#allocation6], %s1925_s7, %s1925_s7, %s1926_s8  }
  0x14   :  { %s1927_s11 = smov [#allocation2]   ;;  %s1828_s15 = scalar_lea.hbm %s2263_s0, 1024 }
  0x15   :  { %s21_s12 = sshll.u32 %s1927_s11, 4  ;;  %p1829_p8 = scmp.ne.s32.totalorder %s2263_s0, %s1828_s15  ;;  %s22_s12 = int_to_ptr.vmem [resolvable:$true] %s21_s12 }
  0x16   :  { %p1832_p9 = scmp.lt.u32.totalorder %s1828_s15, %s2263_s0 }
  0x18   :  { %p1834_p10 = pnand %p1832_p9, %p1829_p8 }
  0x1a   :  { %1837 = shalt.err (!%p1834_p10)
}
  0x1b   :  { %s1838_s20 = scalar_lea.vmem %s22_s12, 1024  ;;  %p1843_p12 = scmp.lt.s32.totalorder %s22_s12, %s22_s12 }
  0x1c   :  { %p1839_p11 = scmp.ne.s32.totalorder %s22_s12, %s1838_s20  ;;  %p1844_p13 = scmp.lt.s32.totalorder %s1838_s20, %s1838_s20 }
  0x1e   :  { %p1845_p0 = por %p1844_p13, %p1843_p12 }
  0x20   :  { %p1846_p1 = pnand %p1845_p0, %p1839_p11 }
  0x22   :  { %1849 = shalt.err (!%p1846_p1)
}
  0x23   :  { %s1928_s1 = smov 64   ;;  %s1929_s21 = smov 4  }
  0x24   :  { %27 = dma.hbm_to_vmem [thread:$0]  %s2263_s0, 1024, %s22_s12, [#allocation3], %s1928_s1, %s1928_s1, %s1929_s21  }
  0x25   :  { %s1930_s24 = smov [#allocation7]   ;;  %s1850_s28 = scalar_lea.hbm %s2265_s2, 4096 }
  0x26   :  { %s45_s25 = sshll.u32 %s1930_s24, 4  ;;  %p1851_p2 = scmp.ne.s32.totalorder %s2265_s2, %s1850_s28  ;;  %s46_s25 = int_to_ptr.vmem [resolvable:$true] %s45_s25 }
  0x27   :  { %p1854_p3 = scmp.lt.u32.totalorder %s1850_s28, %s2265_s2 }
  0x29   :  { %p1856_p4 = pnand %p1854_p3, %p1851_p2 }
  0x2b   :  { %1859 = shalt.err (!%p1856_p4)
}
  0x2c   :  { %s1860_s11 = scalar_lea.vmem %s46_s25, 4096  ;;  %p1865_p6 = scmp.lt.s32.totalorder %s46_s25, %s46_s25 }
  0x2d   :  { %p1861_p5 = scmp.ne.s32.totalorder %s46_s25, %s1860_s11  ;;  %p1866_p7 = scmp.lt.s32.totalorder %s1860_s11, %s1860_s11 }
  0x2f   :  { %p1867_p8 = por %p1866_p7, %p1865_p6 }
  0x31   :  { %p1868_p9 = pnand %p1867_p8, %p1861_p5 }
  0x33   :  { %1871 = shalt.err (!%p1868_p9)
}
  0x34   :  { %51 = dma.hbm_to_vmem [thread:$0]  %s2265_s2, 4096, %s46_s25, [#allocation6], %s1925_s7, %s1925_s7, %s1926_s8  }
  0x35   :  { %1916 = dma.done.wait [#allocation3], 1024  }
  0x36   :  { %1917 = vsyncadd [#allocation3], 4294966272 }
  0x37   :  { %1918 = dma.done.wait [#allocation6], 8192  }
  0x38   :  { %1919 = vsyncadd [#allocation6], 4294959104  ;;  %v1931_v0 = vmov 0   ;;  %v1702_v1 = vld [vmem:[#allocation5 + $0x4] ss:$16 sps:$4 sm:$0xff]   ;;  %v2019_v44 = vld [vmem:[#allocation2 + $0x8] sm:$0xff]  }
  0x39   :  { %376 = vmatprep.mubr.bf16.mxu0 %v1931_v0  ;;  %489 = vmatprep.mubr.bf16.mxu1 %v1931_v0  ;;  %v1704_v2 = vld [vmem:[#allocation5 + $0xc] ss:$16 sps:$4 sm:$0xff]   ;;  %v1706_v3 = vld [vmem:[#allocation5] ss:$16 sps:$4 sm:$0xff]   ;;  %v1707_v4 = vld [vmem:[#allocation5 + $0x8] ss:$16 sps:$4 sm:$0xff]  }
  0x3a   :  { %344 = vmatprep.subr.bf16.mxu0 %v1702_v1  ;;  %457 = vmatprep.subr.bf16.mxu1 %v1704_v2  ;;  %v1708_v5 = vld [vmem:[#allocation5 + $0x24] ss:$16 sps:$4 sm:$0xff]   ;;  %v1710_v6 = vld [vmem:[#allocation5 + $0x2c] ss:$16 sps:$4 sm:$0xff]   ;;  %v1712_v7 = vld [vmem:[#allocation5 + $0x20] ss:$16 sps:$4 sm:$0xff]  }
  0x3b   :  { %345 = vmatpush1.bf16.msra.mxu0 %v1706_v3  ;;  %458 = vmatpush1.bf16.msra.mxu1 %v1707_v4  ;;  %v1713_v8 = vld [vmem:[#allocation5 + $0x28] ss:$16 sps:$4 sm:$0xff]   ;;  %v1714_v9 = vld [vmem:[#allocation5 + $0x44] ss:$16 sps:$4 sm:$0xff]   ;;  %v1716_v10 = vld [vmem:[#allocation5 + $0x4c] ss:$16 sps:$4 sm:$0xff]  }
  0x3c   :  { %346 = vmatprep.subr.bf16.mxu0 %v1708_v5  ;;  %459 = vmatprep.subr.bf16.mxu1 %v1710_v6  ;;  %v1718_v11 = vld [vmem:[#allocation5 + $0x40] ss:$16 sps:$4 sm:$0xff]   ;;  %v1719_v12 = vld [vmem:[#allocation5 + $0x48] ss:$16 sps:$4 sm:$0xff]   ;;  %v1720_v13 = vld [vmem:[#allocation5 + $0x64] ss:$16 sps:$4 sm:$0xff]  }
  0x3d   :  { %v1722_v14 = vld [vmem:[#allocation5 + $0x6c] ss:$16 sps:$4 sm:$0xff]   ;;  %v1724_v15 = vld [vmem:[#allocation5 + $0x60] ss:$16 sps:$4 sm:$0xff]   ;;  %v1725_v16 = vld [vmem:[#allocation5 + $0x68] ss:$16 sps:$4 sm:$0xff]  }
  0x3e   :  { %v1726_v17 = vld [vmem:[#allocation5 + $0x84] ss:$16 sps:$4 sm:$0xff]   ;;  %v1728_v18 = vld [vmem:[#allocation5 + $0x8c] ss:$16 sps:$4 sm:$0xff]   ;;  %v1730_v19 = vld [vmem:[#allocation5 + $0x80] ss:$16 sps:$4 sm:$0xff]  }
  0x3f   :  { %347 = vmatpush1.bf16.msra.mxu0 %v1712_v7  ;;  %460 = vmatpush1.bf16.msra.mxu1 %v1713_v8  ;;  %v1731_v20 = vld [vmem:[#allocation5 + $0x88] ss:$16 sps:$4 sm:$0xff]   ;;  %v1732_v21 = vld [vmem:[#allocation5 + $0xa4] ss:$16 sps:$4 sm:$0xff]   ;;  %v1734_v22 = vld [vmem:[#allocation5 + $0xac] ss:$16 sps:$4 sm:$0xff]  }
  0x40   :  { %348 = vmatprep.subr.bf16.mxu0 %v1714_v9  ;;  %461 = vmatprep.subr.bf16.mxu1 %v1716_v10  ;;  %v1736_v23 = vld [vmem:[#allocation5 + $0xa0] ss:$16 sps:$4 sm:$0xff]   ;;  %v1737_v24 = vld [vmem:[#allocation5 + $0xa8] ss:$16 sps:$4 sm:$0xff]   ;;  %v1738_v25 = vld [vmem:[#allocation5 + $0xc4] ss:$16 sps:$4 sm:$0xff]   ;;  %v116_v10 = vlaneseq }
  0x41   :  { %v1740_v26 = vld [vmem:[#allocation5 + $0xcc] ss:$16 sps:$4 sm:$0xff]   ;;  %v1742_v27 = vld [vmem:[#allocation5 + $0xc0] ss:$16 sps:$4 sm:$0xff]   ;;  %v1743_v28 = vld [vmem:[#allocation5 + $0xc8] ss:$16 sps:$4 sm:$0xff]  }
  0x42   :  { %v1744_v29 = vld [vmem:[#allocation5 + $0xe4] ss:$16 sps:$4 sm:$0xff]   ;;  %v1746_v30 = vld [vmem:[#allocation5 + $0xec] ss:$16 sps:$4 sm:$0xff]   ;;  %v1748_v31 = vld [vmem:[#allocation5 + $0xe0] ss:$16 sps:$4 sm:$0xff]  }
  0x43   :  { %349 = vmatpush1.bf16.msra.mxu0 %v1718_v11  ;;  %462 = vmatpush1.bf16.msra.mxu1 %v1719_v12  ;;  %v1749_v32 = vld [vmem:[#allocation5 + $0xe8] ss:$16 sps:$4 sm:$0xff]   ;;  %v1753_v33 = vld [vmem:[#allocation7 + $0x4] ss:$16 sps:$4 sm:$0xff]   ;;  %v1756_v34 = vld [vmem:[#allocation7 + $0xc] ss:$16 sps:$4 sm:$0xff]  }
  0x44   :  { %350 = vmatprep.subr.bf16.mxu0 %v1720_v13  ;;  %463 = vmatprep.subr.bf16.mxu1 %v1722_v14  ;;  %v2013_v35 = vld [vmem:[#allocation2] sm:$0xff]   ;;  %v1754_v37 = vld [vmem:[#allocation7 + $0x8] ss:$16 sps:$4 sm:$0xff]   ;;  %v1763_v39 = vld [vmem:[#allocation7 + $0x2c] ss:$16 sps:$4 sm:$0xff]   ;;  %v2061_v11 = vshrl.u32 %v116_v10, 7 }
  0x45   :  { %v1751_v36 = vld [vmem:[#allocation7] ss:$16 sps:$4 sm:$0xff]   ;;  %v1760_v38 = vld [vmem:[#allocation7 + $0x24] ss:$16 sps:$4 sm:$0xff]   ;;  %v1761_v41 = vld [vmem:[#allocation7 + $0x28] ss:$16 sps:$4 sm:$0xff]  }
  0x46   :  { %v1758_v40 = vld [vmem:[#allocation7 + $0x20] ss:$16 sps:$4 sm:$0xff]   ;;  %v1767_v42 = vld [vmem:[#allocation7 + $0x44] ss:$16 sps:$4 sm:$0xff]   ;;  %v1770_v43 = vld [vmem:[#allocation7 + $0x4c] ss:$16 sps:$4 sm:$0xff]  }
  0x47   :  { %351 = vmatpush1.bf16.msra.mxu0 %v1724_v15  ;;  %464 = vmatpush1.bf16.msra.mxu1 %v1725_v16  ;;  %v1765_v45 = vld [vmem:[#allocation7 + $0x40] ss:$16 sps:$4 sm:$0xff]   ;;  %v1768_v46 = vld [vmem:[#allocation7 + $0x48] ss:$16 sps:$4 sm:$0xff]   ;;  %v1774_v47 = vld [vmem:[#allocation7 + $0x64] ss:$16 sps:$4 sm:$0xff]  }
  0x48   :  { %352 = vmatprep.subr.bf16.mxu0 %v1726_v17  ;;  %465 = vmatprep.subr.bf16.mxu1 %v1728_v18  ;;  %v1777_v48 = vld [vmem:[#allocation7 + $0x6c] ss:$16 sps:$4 sm:$0xff]   ;;  %v1772_v49 = vld [vmem:[#allocation7 + $0x60] ss:$16 sps:$4 sm:$0xff]   ;;  %v1775_v50 = vld [vmem:[#allocation7 + $0x68] ss:$16 sps:$4 sm:$0xff]  }
  0x49   :  { %v1781_v51 = vld [vmem:[#allocation7 + $0x84] ss:$16 sps:$4 sm:$0xff]   ;;  %v1784_v52 = vld [vmem:[#allocation7 + $0x8c] ss:$16 sps:$4 sm:$0xff]   ;;  %v1779_v54 = vld [vmem:[#allocation7 + $0x80] ss:$16 sps:$4 sm:$0xff]  }
  0x4a   :  { %v2025_v53 = vld [vmem:[#allocation2 + $0x10] sm:$0xff]   ;;  %v1782_v55 = vld [vmem:[#allocation7 + $0x88] ss:$16 sps:$4 sm:$0xff]   ;;  %v1791_v57 = vld [vmem:[#allocation7 + $0xac] ss:$16 sps:$4 sm:$0xff]   ;;  %v118_v12 = vsub.s32 0, %v2061_v11 }
  0x4b   :  { %353 = vmatpush1.bf16.msra.mxu0 %v1730_v19  ;;  %466 = vmatpush1.bf16.msra.mxu1 %v1731_v20  ;;  %v1788_v56 = vld [vmem:[#allocation7 + $0xa4] ss:$16 sps:$4 sm:$0xff]   ;;  %v1786_v58 = vld [vmem:[#allocation7 + $0xa0] ss:$16 sps:$4 sm:$0xff]   ;;  %v1789_v59 = vld [vmem:[#allocation7 + $0xa8] ss:$16 sps:$4 sm:$0xff]  }
  0x4c   :  { %354 = vmatprep.subr.bf16.mxu0 %v1732_v21  ;;  %467 = vmatprep.subr.bf16.mxu1 %v1734_v22  ;;  %v1795_v60 = vld [vmem:[#allocation7 + $0xc4] ss:$16 sps:$4 sm:$0xff]   ;;  %v1798_v61 = vld [vmem:[#allocation7 + $0xcc] ss:$16 sps:$4 sm:$0xff]   ;;  %v1793_v63 = vld [vmem:[#allocation7 + $0xc0] ss:$16 sps:$4 sm:$0xff]  }
  0x4d   :  { %v1771_v62 = vld [vmem:[#allocation2 + $0x18] sm:$0xff]   ;;  %v1802_v2 = vld [vmem:[#allocation7 + $0xe4] ss:$16 sps:$4 sm:$0xff]   ;;  %v1800_v4 = vld [vmem:[#allocation7 + $0xe0] ss:$16 sps:$4 sm:$0xff]   ;;  %v126_v13 = vsub.s32 2, %v2061_v11 }
  0x4e   :  { %v1796_v1 = vld [vmem:[#allocation7 + $0xc8] ss:$16 sps:$4 sm:$0xff]   ;;  %v1805_v3 = vld [vmem:[#allocation7 + $0xec] ss:$16 sps:$4 sm:$0xff]   ;;  %v1778_v6 = vld [vmem:[#allocation2 + $0x20] sm:$0xff]   ;;  %v122_v15 = vsub.s32 1, %v2061_v11 }
  0x4f   :  { %355 = vmatpush1.bf16.msra.mxu0 %v1736_v23  ;;  %468 = vmatpush1.bf16.msra.mxu1 %v1737_v24  ;;  %v1803_v5 = vld [vmem:[#allocation7 + $0xe8] ss:$16 sps:$4 sm:$0xff]   ;;  %v1792_v8 = vld [vmem:[#allocation2 + $0x30] sm:$0xff]   ;;  %v114_v14 = vld [vmem:[%s2266_s3] sm:$0xf]  ;;  %v130_v16 = vsub.s32 3, %v2061_v11 }
  0x50   :  { %356 = vmatprep.subr.bf16.mxu0 %v1738_v25  ;;  %469 = vmatprep.subr.bf16.mxu1 %v1740_v26  ;;  %v1785_v7 = vld [vmem:[#allocation2 + $0x28] sm:$0xff]   ;;  %v1799_v9 = vld [vmem:[#allocation2 + $0x38] sm:$0xff]   ;;  %v2076_v17 = vrot.slane %v114_v14, %v126_v13  ;;  %v2080_v18 = vrot.slane %v114_v14, %v122_v15  ;;  %s1932_s15 = smov [#allocation8]  }
  0x51   :  { %v2084_v19 = vrot.slane %v114_v14, %v130_v16  ;;  %s1463_s16 = sshll.u32 %s1932_s15, 4  ;;  %s1464_s16 = int_to_ptr.vmem [resolvable:$true] %s1463_s16 }
  0x52   :  { %p1877_p11 = scmp.lt.s32.totalorder %s1464_s16, %s1464_s16 }
  0x53   :  { %357 = vmatpush1.bf16.msra.mxu0 %v1742_v27  ;;  %470 = vmatpush1.bf16.msra.mxu1 %v1743_v28 }
  0x54   :  { %358 = vmatprep.subr.bf16.mxu0 %v1744_v29  ;;  %471 = vmatprep.subr.bf16.mxu1 %v1746_v30 }
  0x57   :  { %359 = vmatpush1.bf16.msra.mxu0 %v1748_v31  ;;  %472 = vmatpush1.bf16.msra.mxu1 %v1749_v32 }
  0x58   :  { %784 = vmatprep.subr.bf16.mxu0 %v1753_v33  ;;  %897 = vmatprep.subr.bf16.mxu1 %v1756_v34 }
  0x5a   :  { %377 = vmatmul.mubr.bf16.vlgmr.msra.gmra.mrb[0].mxu0 %v2013_v35  ;;  %490 = vmatmul.mubr.bf16.vlgmr.msra.gmra.mrb[0].mxu1 %v2013_v35 }
  0x5b   :  { %785 = vmatpush1.bf16.msra.mxu0 %v1751_v36  ;;  %898 = vmatpush1.bf16.msra.mxu1 %v1754_v37 }
  0x5c   :  { %386 = vmatprep.mubr.bf16.mxu0 %v1931_v0  ;;  %499 = vmatprep.mubr.bf16.mxu1 %v1931_v0 }
  0x5d   :  { %786 = vmatprep.subr.bf16.mxu0 %v1760_v38  ;;  %899 = vmatprep.subr.bf16.mxu1 %v1763_v39 }
  0x5f   :  { %787 = vmatpush1.bf16.msra.mxu0 %v1758_v40  ;;  %900 = vmatpush1.bf16.msra.mxu1 %v1761_v41 }
  0x60   :  { %788 = vmatprep.subr.bf16.mxu0 %v1767_v42  ;;  %901 = vmatprep.subr.bf16.mxu1 %v1770_v43 }
  0x62   :  { %387 = vmatmul.mubr.bf16.gmra.mrb[4].mxu0 %v2019_v44  ;;  %500 = vmatmul.mubr.bf16.gmra.mrb[4].mxu1 %v2019_v44 }
  0x63   :  { %396 = vmatprep.mubr.bf16.mxu0 %v1931_v0  ;;  %509 = vmatprep.mubr.bf16.mxu1 %v1931_v0 }
  0x64   :  { %789 = vmatpush1.bf16.msra.mxu0 %v1765_v45  ;;  %902 = vmatpush1.bf16.msra.mxu1 %v1768_v46 }
  0x65   :  { %790 = vmatprep.subr.bf16.mxu0 %v1774_v47  ;;  %903 = vmatprep.subr.bf16.mxu1 %v1777_v48 }
  0x68   :  { %791 = vmatpush1.bf16.msra.mxu0 %v1772_v49  ;;  %904 = vmatpush1.bf16.msra.mxu1 %v1775_v50 }
  0x69   :  { %792 = vmatprep.subr.bf16.mxu0 %v1781_v51  ;;  %905 = vmatprep.subr.bf16.mxu1 %v1784_v52 }
  0x6a   :  { %397 = vmatmul.mubr.bf16.gmra.mrb[8].mxu0 %v2025_v53  ;;  %510 = vmatmul.mubr.bf16.gmra.mrb[8].mxu1 %v2025_v53 }
  0x6b   :  { %406 = vmatprep.mubr.bf16.mxu0 %v1931_v0  ;;  %519 = vmatprep.mubr.bf16.mxu1 %v1931_v0 }
  0x6c   :  { %793 = vmatpush1.bf16.msra.mxu0 %v1779_v54  ;;  %906 = vmatpush1.bf16.msra.mxu1 %v1782_v55 }
  0x6d   :  { %794 = vmatprep.subr.bf16.mxu0 %v1788_v56  ;;  %907 = vmatprep.subr.bf16.mxu1 %v1791_v57 }
  0x70   :  { %795 = vmatpush1.bf16.msra.mxu0 %v1786_v58  ;;  %908 = vmatpush1.bf16.msra.mxu1 %v1789_v59 }
  0x71   :  { %796 = vmatprep.subr.bf16.mxu0 %v1795_v60  ;;  %909 = vmatprep.subr.bf16.mxu1 %v1798_v61 }
  0x72   :  { %407 = vmatmul.mubr.bf16.gmra.mrb[12].mxu0 %v1771_v62  ;;  %520 = vmatmul.mubr.bf16.gmra.mrb[12].mxu1 %v1771_v62 }
  0x73   :  { %416 = vmatprep.mubr.bf16.mxu0 %v1931_v0  ;;  %529 = vmatprep.mubr.bf16.mxu1 %v1931_v0 }
  0x74   :  { %797 = vmatpush1.bf16.msra.mxu0 %v1793_v63  ;;  %910 = vmatpush1.bf16.msra.mxu1 %v1796_v1 }
  0x75   :  { %798 = vmatprep.subr.bf16.mxu0 %v1802_v2  ;;  %911 = vmatprep.subr.bf16.mxu1 %v1805_v3 }
  0x78   :  { %799 = vmatpush1.bf16.msra.mxu0 %v1800_v4  ;;  %912 = vmatpush1.bf16.msra.mxu1 %v1803_v5 }
  0x7a   :  { %417 = vmatmul.mubr.bf16.gmra.mrb[16].mxu0 %v1778_v6  ;;  %530 = vmatmul.mubr.bf16.gmra.mrb[16].mxu1 %v1778_v6 }
  0x7b   :  { %426 = vmatprep.mubr.bf16.mxu0 %v1931_v0  ;;  %539 = vmatprep.mubr.bf16.mxu1 %v1931_v0 }
  0x82   :  { %427 = vmatmul.mubr.bf16.gmra.mrb[20].mxu0 %v1785_v7  ;;  %540 = vmatmul.mubr.bf16.gmra.mrb[20].mxu1 %v1785_v7 }
  0x83   :  { %436 = vmatprep.mubr.bf16.mxu0 %v1931_v0  ;;  %549 = vmatprep.mubr.bf16.mxu1 %v1931_v0 }
  0x8a   :  { %437 = vmatmul.mubr.bf16.gmra.mrb[24].mxu0 %v1792_v8  ;;  %550 = vmatmul.mubr.bf16.gmra.mrb[24].mxu1 %v1792_v8 }
  0x8b   :  { %446 = vmatprep.mubr.bf16.mxu0 %v1931_v0  ;;  %559 = vmatprep.mubr.bf16.mxu1 %v1931_v0 }
  0x92   :  { %447 = vmatmul.mubr.bf16.gmra.mrb[28].mxu0 %v1799_v9  ;;  %560 = vmatmul.mubr.bf16.gmra.mrb[28].mxu1 %v1799_v9 }
  0x93   :  { %816 = vmatprep.mubr.bf16.mxu0 %v1931_v0  ;;  %929 = vmatprep.mubr.bf16.mxu1 %v1931_v0 }
  0x9a   :  { %817 = vmatmul.mubr.bf16.vlgmr.msra.gmra.mrb[32].mxu0 %v2013_v35  ;;  %930 = vmatmul.mubr.bf16.vlgmr.msra.gmra.mrb[32].mxu1 %v2013_v35 }
  0x9b   :  { %826 = vmatprep.mubr.bf16.mxu0 %v1931_v0  ;;  %939 = vmatprep.mubr.bf16.mxu1 %v1931_v0 }
  0xa2   :  { %827 = vmatmul.mubr.bf16.gmra.mrb[36].mxu0 %v2019_v44  ;;  %940 = vmatmul.mubr.bf16.gmra.mrb[36].mxu1 %v2019_v44 }
  0xa3   :  { %836 = vmatprep.mubr.bf16.mxu0 %v1931_v0  ;;  %949 = vmatprep.mubr.bf16.mxu1 %v1931_v0 }
  0xaa   :  { %837 = vmatmul.mubr.bf16.gmra.mrb[40].mxu0 %v2025_v53  ;;  %950 = vmatmul.mubr.bf16.gmra.mrb[40].mxu1 %v2025_v53 }
  0xab   :  { %846 = vmatprep.mubr.bf16.mxu0 %v1931_v0  ;;  %959 = vmatprep.mubr.bf16.mxu1 %v1931_v0 }
  0xb2   :  { %847 = vmatmul.mubr.bf16.gmra.mrb[44].mxu0 %v1771_v62  ;;  %960 = vmatmul.mubr.bf16.gmra.mrb[44].mxu1 %v1771_v62 }
  0xb3   :  { %856 = vmatprep.mubr.bf16.mxu0 %v1931_v0  ;;  %969 = vmatprep.mubr.bf16.mxu1 %v1931_v0 }
  0xba   :  { %857 = vmatmul.mubr.bf16.gmra.mrb[48].mxu0 %v1778_v6  ;;  %970 = vmatmul.mubr.bf16.gmra.mrb[48].mxu1 %v1778_v6 }
  0xbb   :  { %866 = vmatprep.mubr.bf16.mxu0 %v1931_v0  ;;  %979 = vmatprep.mubr.bf16.mxu1 %v1931_v0 }
  0xc2   :  { %867 = vmatmul.mubr.bf16.gmra.mrb[52].mxu0 %v1785_v7  ;;  %980 = vmatmul.mubr.bf16.gmra.mrb[52].mxu1 %v1785_v7 }
  0xc3   :  { %876 = vmatprep.mubr.bf16.mxu0 %v1931_v0  ;;  %989 = vmatprep.mubr.bf16.mxu1 %v1931_v0 }
  0xca   :  { %877 = vmatmul.mubr.bf16.gmra.mrb[56].mxu0 %v1792_v8  ;;  %990 = vmatmul.mubr.bf16.gmra.mrb[56].mxu1 %v1792_v8 }
  0xcb   :  { %886 = vmatprep.mubr.bf16.mxu0 %v1931_v0  ;;  %999 = vmatprep.mubr.bf16.mxu1 %v1931_v0  ;;  %v2072_v0 = vrot.slane %v114_v14, %v118_v12 }
  0xd2   :  { %887 = vmatmul.mubr.bf16.gmra.mrb[60].mxu0 %v1799_v9  ;;  %1000 = vmatmul.mubr.bf16.gmra.mrb[60].mxu1 %v1799_v9 }
 0x12d   :  { %v378_v20 = vpop.f32.mrb[0].mxu0  ;;  %v491_v21 = vpop.f32.mrb[0].mxu1 }
 0x12e   :  { %v379_v22 = vadd.f32 %v378_v20, %v2072_v0  ;;  %v492_v23 = vadd.f32 %v491_v21, %v2076_v17  ;;  %v380_v24 = vpop.f32.mrb[1].mxu0  ;;  %v493_v25 = vpop.f32.mrb[1].mxu1 }
 0x12f   :  { %v381_v26 = vadd.f32 %v380_v24, %v2080_v18  ;;  %v494_v27 = vadd.f32 %v493_v25, %v2084_v19  ;;  %v382_v28 = vpop.f32.mrb[2].mxu0  ;;  %v495_v29 = vpop.f32.mrb[2].mxu1 }
 0x130   :  { %v383_v30 = vadd.f32 %v382_v28, %v2072_v0  ;;  %v496_v31 = vadd.f32 %v495_v29, %v2076_v17  ;;  %v384_v32 = vpop.f32.mrb[3].mxu0  ;;  %v497_v33 = vpop.f32.mrb[3].mxu1 }
 0x131   :  { %v1628_v34 = vpack.c.bf16 %v381_v26, %v379_v22  ;;  %v1629_v35 = vpack.c.bf16 %v494_v27, %v492_v23  ;;  %v385_v36 = vadd.f32 %v384_v32, %v2080_v18  ;;  %v498_v37 = vadd.f32 %v497_v33, %v2084_v19 }
 0x133   :  { %1202 = vst [vmem:[#allocation8] sm:$0xff] %v1628_v34  ;;  %1203 = vst [vmem:[#allocation8 + $0x8] sm:$0xff] %v1629_v35  ;;  %v1630_v38 = vpack.c.bf16 %v385_v36, %v383_v30  ;;  %v1631_v39 = vpack.c.bf16 %v498_v37, %v496_v31 }
 0x135   :  { %1204 = vst [vmem:[#allocation8 + $0x10] sm:$0xff] %v1630_v38  ;;  %1205 = vst [vmem:[#allocation8 + $0x18] sm:$0xff] %v1631_v39  ;;  %v388_v40 = vpop.f32.mrb[4].mxu0  ;;  %v501_v41 = vpop.f32.mrb[4].mxu1 }
 0x136   :  { %v389_v42 = vadd.f32 %v388_v40, %v2072_v0  ;;  %v502_v43 = vadd.f32 %v501_v41, %v2076_v17  ;;  %v390_v44 = vpop.f32.mrb[5].mxu0  ;;  %v503_v45 = vpop.f32.mrb[5].mxu1 }
 0x137   :  { %v391_v46 = vadd.f32 %v390_v44, %v2080_v18  ;;  %v504_v47 = vadd.f32 %v503_v45, %v2084_v19  ;;  %v392_v48 = vpop.f32.mrb[6].mxu0  ;;  %v505_v49 = vpop.f32.mrb[6].mxu1 }
 0x138   :  { %v393_v50 = vadd.f32 %v392_v48, %v2072_v0  ;;  %v506_v51 = vadd.f32 %v505_v49, %v2076_v17  ;;  %v394_v52 = vpop.f32.mrb[7].mxu0  ;;  %v507_v53 = vpop.f32.mrb[7].mxu1 }
 0x139   :  { %v1632_v54 = vpack.c.bf16 %v391_v46, %v389_v42  ;;  %v1633_v55 = vpack.c.bf16 %v504_v47, %v502_v43  ;;  %v395_v56 = vadd.f32 %v394_v52, %v2080_v18  ;;  %v508_v57 = vadd.f32 %v507_v53, %v2084_v19 }
 0x13b   :  { %1206 = vst [vmem:[#allocation8 + $0x20] sm:$0xff] %v1632_v54  ;;  %1207 = vst [vmem:[#allocation8 + $0x28] sm:$0xff] %v1633_v55  ;;  %v1634_v58 = vpack.c.bf16 %v395_v56, %v393_v50  ;;  %v1635_v59 = vpack.c.bf16 %v508_v57, %v506_v51 }
 0x13d   :  { %1208 = vst [vmem:[#allocation8 + $0x30] sm:$0xff] %v1634_v58  ;;  %1209 = vst [vmem:[#allocation8 + $0x38] sm:$0xff] %v1635_v59  ;;  %v398_v60 = vpop.f32.mrb[8].mxu0  ;;  %v511_v61 = vpop.f32.mrb[8].mxu1 }
 0x13e   :  { %v399_v62 = vadd.f32 %v398_v60, %v2072_v0  ;;  %v512_v63 = vadd.f32 %v511_v61, %v2076_v17  ;;  %v400_v1 = vpop.f32.mrb[9].mxu0  ;;  %v513_v2 = vpop.f32.mrb[9].mxu1 }
 0x13f   :  { %v401_v3 = vadd.f32 %v400_v1, %v2080_v18  ;;  %v514_v4 = vadd.f32 %v513_v2, %v2084_v19  ;;  %v402_v5 = vpop.f32.mrb[10].mxu0  ;;  %v515_v6 = vpop.f32.mrb[10].mxu1 }
 0x140   :  { %v403_v7 = vadd.f32 %v402_v5, %v2072_v0  ;;  %v516_v8 = vadd.f32 %v515_v6, %v2076_v17  ;;  %v404_v9 = vpop.f32.mrb[11].mxu0  ;;  %v517_v10 = vpop.f32.mrb[11].mxu1 }
 0x141   :  { %v1636_v14 = vpack.c.bf16 %v401_v3, %v399_v62  ;;  %v1637_v20 = vpack.c.bf16 %v514_v4, %v512_v63  ;;  %v405_v21 = vadd.f32 %v404_v9, %v2080_v18  ;;  %v518_v22 = vadd.f32 %v517_v10, %v2084_v19 }
 0x143   :  { %1210 = vst [vmem:[#allocation8 + $0x40] sm:$0xff] %v1636_v14  ;;  %1211 = vst [vmem:[#allocation8 + $0x48] sm:$0xff] %v1637_v20  ;;  %v1638_v23 = vpack.c.bf16 %v405_v21, %v403_v7  ;;  %v1639_v24 = vpack.c.bf16 %v518_v22, %v516_v8 }
 0x145   :  { %1212 = vst [vmem:[#allocation8 + $0x50] sm:$0xff] %v1638_v23  ;;  %1213 = vst [vmem:[#allocation8 + $0x58] sm:$0xff] %v1639_v24  ;;  %v408_v25 = vpop.f32.mrb[12].mxu0  ;;  %v521_v26 = vpop.f32.mrb[12].mxu1 }
 0x146   :  { %v409_v27 = vadd.f32 %v408_v25, %v2072_v0  ;;  %v522_v28 = vadd.f32 %v521_v26, %v2076_v17  ;;  %v410_v29 = vpop.f32.mrb[13].mxu0  ;;  %v523_v30 = vpop.f32.mrb[13].mxu1 }
 0x147   :  { %v411_v31 = vadd.f32 %v410_v29, %v2080_v18  ;;  %v524_v32 = vadd.f32 %v523_v30, %v2084_v19  ;;  %v412_v33 = vpop.f32.mrb[14].mxu0  ;;  %v525_v34 = vpop.f32.mrb[14].mxu1 }
 0x148   :  { %v413_v35 = vadd.f32 %v412_v33, %v2072_v0  ;;  %v526_v36 = vadd.f32 %v525_v34, %v2076_v17  ;;  %v414_v37 = vpop.f32.mrb[15].mxu0  ;;  %v527_v38 = vpop.f32.mrb[15].mxu1 }
 0x149   :  { %v1640_v39 = vpack.c.bf16 %v411_v31, %v409_v27  ;;  %v1641_v40 = vpack.c.bf16 %v524_v32, %v522_v28  ;;  %v415_v41 = vadd.f32 %v414_v37, %v2080_v18  ;;  %v528_v42 = vadd.f32 %v527_v38, %v2084_v19 }
 0x14b   :  { %1214 = vst [vmem:[#allocation8 + $0x60] sm:$0xff] %v1640_v39  ;;  %1215 = vst [vmem:[#allocation8 + $0x68] sm:$0xff] %v1641_v40  ;;  %v1642_v43 = vpack.c.bf16 %v415_v41, %v413_v35  ;;  %v1643_v44 = vpack.c.bf16 %v528_v42, %v526_v36 }
 0x14d   :  { %1216 = vst [vmem:[#allocation8 + $0x70] sm:$0xff] %v1642_v43  ;;  %1217 = vst [vmem:[#allocation8 + $0x78] sm:$0xff] %v1643_v44  ;;  %v418_v45 = vpop.f32.mrb[16].mxu0  ;;  %v531_v46 = vpop.f32.mrb[16].mxu1 }
 0x14e   :  { %v419_v47 = vadd.f32 %v418_v45, %v2072_v0  ;;  %v532_v48 = vadd.f32 %v531_v46, %v2076_v17  ;;  %v420_v49 = vpop.f32.mrb[17].mxu0  ;;  %v533_v50 = vpop.f32.mrb[17].mxu1 }
 0x14f   :  { %v421_v51 = vadd.f32 %v420_v49, %v2080_v18  ;;  %v534_v52 = vadd.f32 %v533_v50, %v2084_v19  ;;  %v422_v53 = vpop.f32.mrb[18].mxu0  ;;  %v535_v54 = vpop.f32.mrb[18].mxu1 }
 0x150   :  { %v423_v55 = vadd.f32 %v422_v53, %v2072_v0  ;;  %v536_v56 = vadd.f32 %v535_v54, %v2076_v17  ;;  %v424_v57 = vpop.f32.mrb[19].mxu0  ;;  %v537_v58 = vpop.f32.mrb[19].mxu1 }
 0x151   :  { %v1644_v59 = vpack.c.bf16 %v421_v51, %v419_v47  ;;  %v1645_v60 = vpack.c.bf16 %v534_v52, %v532_v48  ;;  %v425_v61 = vadd.f32 %v424_v57, %v2080_v18  ;;  %v538_v62 = vadd.f32 %v537_v58, %v2084_v19 }
 0x153   :  { %1218 = vst [vmem:[#allocation8 + $0x80] sm:$0xff] %v1644_v59  ;;  %1219 = vst [vmem:[#allocation8 + $0x88] sm:$0xff] %v1645_v60  ;;  %v1646_v63 = vpack.c.bf16 %v425_v61, %v423_v55  ;;  %v1647_v1 = vpack.c.bf16 %v538_v62, %v536_v56  ;;  %v602_v60 = vld [vmem:[%s2267_s4] sm:$0xf]  ;;  %s1872_s4 = scalar_lea.vmem %s1464_s16, 4096 }
 0x154   :  { %p1873_p10 = scmp.ne.s32.totalorder %s1464_s16, %s1872_s4  ;;  %p1878_p12 = scmp.lt.s32.totalorder %s1872_s4, %s1872_s4 }
 0x155   :  { %1220 = vst [vmem:[#allocation8 + $0x90] sm:$0xff] %v1646_v63  ;;  %1221 = vst [vmem:[#allocation8 + $0x98] sm:$0xff] %v1647_v1  ;;  %v428_v2 = vpop.f32.mrb[20].mxu0  ;;  %v541_v3 = vpop.f32.mrb[20].mxu1 }
 0x156   :  { %v429_v4 = vadd.f32 %v428_v2, %v2072_v0  ;;  %v542_v5 = vadd.f32 %v541_v3, %v2076_v17  ;;  %v430_v6 = vpop.f32.mrb[21].mxu0  ;;  %v543_v7 = vpop.f32.mrb[21].mxu1  ;;  %p1879_p13 = por %p1878_p12, %p1877_p11 }
 0x157   :  { %v431_v8 = vadd.f32 %v430_v6, %v2080_v18  ;;  %v544_v9 = vadd.f32 %v543_v7, %v2084_v19  ;;  %v432_v10 = vpop.f32.mrb[22].mxu0  ;;  %v545_v14 = vpop.f32.mrb[22].mxu1  ;;  %v2155_v6 = vrot.slane %v602_v60, %v118_v12  ;;  %v2159_v7 = vrot.slane %v602_v60, %v126_v13 }
 0x158   :  { %v433_v20 = vadd.f32 %v432_v10, %v2072_v0  ;;  %v546_v21 = vadd.f32 %v545_v14, %v2076_v17  ;;  %v434_v22 = vpop.f32.mrb[23].mxu0  ;;  %v547_v23 = vpop.f32.mrb[23].mxu1  ;;  %p1880_p0 = pnand %p1879_p13, %p1873_p10 }
 0x159   :  { %v1648_v24 = vpack.c.bf16 %v431_v8, %v429_v4  ;;  %v1649_v25 = vpack.c.bf16 %v544_v9, %v542_v5  ;;  %v435_v26 = vadd.f32 %v434_v22, %v2080_v18  ;;  %v548_v27 = vadd.f32 %v547_v23, %v2084_v19 }
 0x15a   :  { %v2163_v8 = vrot.slane %v602_v60, %v122_v15 }
 0x15b   :  { %1222 = vst [vmem:[#allocation8 + $0xa0] sm:$0xff] %v1648_v24  ;;  %1223 = vst [vmem:[#allocation8 + $0xa8] sm:$0xff] %v1649_v25  ;;  %v1650_v28 = vpack.c.bf16 %v435_v26, %v433_v20  ;;  %v1651_v29 = vpack.c.bf16 %v548_v27, %v546_v21 }
 0x15d   :  { %1224 = vst [vmem:[#allocation8 + $0xb0] sm:$0xff] %v1650_v28  ;;  %1225 = vst [vmem:[#allocation8 + $0xb8] sm:$0xff] %v1651_v29  ;;  %v438_v30 = vpop.f32.mrb[24].mxu0  ;;  %v551_v31 = vpop.f32.mrb[24].mxu1 }
 0x15e   :  { %v439_v32 = vadd.f32 %v438_v30, %v2072_v0  ;;  %v552_v33 = vadd.f32 %v551_v31, %v2076_v17  ;;  %v440_v34 = vpop.f32.mrb[25].mxu0  ;;  %v553_v35 = vpop.f32.mrb[25].mxu1 }
 0x15f   :  { %v441_v36 = vadd.f32 %v440_v34, %v2080_v18  ;;  %v554_v37 = vadd.f32 %v553_v35, %v2084_v19  ;;  %v442_v38 = vpop.f32.mrb[26].mxu0  ;;  %v555_v39 = vpop.f32.mrb[26].mxu1 }
 0x160   :  { %v443_v40 = vadd.f32 %v442_v38, %v2072_v0  ;;  %v556_v41 = vadd.f32 %v555_v39, %v2076_v17  ;;  %v444_v42 = vpop.f32.mrb[27].mxu0  ;;  %v557_v43 = vpop.f32.mrb[27].mxu1 }
 0x161   :  { %v1652_v44 = vpack.c.bf16 %v441_v36, %v439_v32  ;;  %v1653_v45 = vpack.c.bf16 %v554_v37, %v552_v33  ;;  %v445_v46 = vadd.f32 %v444_v42, %v2080_v18  ;;  %v558_v47 = vadd.f32 %v557_v43, %v2084_v19 }
 0x163   :  { %1226 = vst [vmem:[#allocation8 + $0xc0] sm:$0xff] %v1652_v44  ;;  %1227 = vst [vmem:[#allocation8 + $0xc8] sm:$0xff] %v1653_v45  ;;  %v1654_v48 = vpack.c.bf16 %v445_v46, %v443_v40  ;;  %v1655_v49 = vpack.c.bf16 %v558_v47, %v556_v41 }
 0x165   :  { %1228 = vst [vmem:[#allocation8 + $0xd0] sm:$0xff] %v1654_v48  ;;  %1229 = vst [vmem:[#allocation8 + $0xd8] sm:$0xff] %v1655_v49  ;;  %v448_v50 = vpop.f32.mrb[28].mxu0  ;;  %v561_v51 = vpop.f32.mrb[28].mxu1 }
 0x166   :  { %v449_v52 = vadd.f32 %v448_v50, %v2072_v0  ;;  %v562_v53 = vadd.f32 %v561_v51, %v2076_v17  ;;  %v450_v54 = vpop.f32.mrb[29].mxu0  ;;  %v563_v55 = vpop.f32.mrb[29].mxu1 }
 0x167   :  { %v451_v56 = vadd.f32 %v450_v54, %v2080_v18  ;;  %v564_v57 = vadd.f32 %v563_v55, %v2084_v19  ;;  %v452_v58 = vpop.f32.mrb[30].mxu0  ;;  %v565_v59 = vpop.f32.mrb[30].mxu1 }
 0x168   :  { %v453_v61 = vadd.f32 %v452_v58, %v2072_v0  ;;  %v566_v62 = vadd.f32 %v565_v59, %v2076_v17  ;;  %v454_v63 = vpop.f32.mrb[31].mxu0  ;;  %v567_v1 = vpop.f32.mrb[31].mxu1 }
 0x169   :  { %v1656_v2 = vpack.c.bf16 %v451_v56, %v449_v52  ;;  %v1657_v3 = vpack.c.bf16 %v564_v57, %v562_v53  ;;  %v455_v4 = vadd.f32 %v454_v63, %v2080_v18  ;;  %v568_v5 = vadd.f32 %v567_v1, %v2084_v19 }
 0x16a   :  { %v2167_v18 = vrot.slane %v602_v60, %v130_v16 }
 0x16b   :  { %1230 = vst [vmem:[#allocation8 + $0xe0] sm:$0xff] %v1656_v2  ;;  %1231 = vst [vmem:[#allocation8 + $0xe8] sm:$0xff] %v1657_v3  ;;  %v1658_v0 = vpack.c.bf16 %v455_v4, %v453_v61  ;;  %v1659_v17 = vpack.c.bf16 %v568_v5, %v566_v62 }
 0x16d   :  { %1232 = vst [vmem:[#allocation8 + $0xf0] sm:$0xff] %v1658_v0  ;;  %1233 = vst [vmem:[#allocation8 + $0xf8] sm:$0xff] %v1659_v17  ;;  %v818_v12 = vpop.f32.mrb[32].mxu0  ;;  %v931_v19 = vpop.f32.mrb[32].mxu1 }
 0x16e   :  { %v819_v13 = vadd.f32 %v818_v12, %v2155_v6  ;;  %v932_v9 = vadd.f32 %v931_v19, %v2159_v7  ;;  %v820_v10 = vpop.f32.mrb[33].mxu0  ;;  %v933_v14 = vpop.f32.mrb[33].mxu1 }
 0x16f   :  { %1883 = shalt.err (!%p1880_p0)
}
 0x170   :  { %s1884_s19 = scalar_lea.hbm %s2268_s5, 4096 }
 0x171   :  { %p1885_p1 = scmp.ne.s32.totalorder %s2268_s5, %s1884_s19  ;;  %p1888_p2 = scmp.lt.u32.totalorder %s1884_s19, %s2268_s5 }
 0x173   :  { %p1890_p3 = pnand %p1888_p2, %p1885_p1 }
 0x175   :  { %1893 = shalt.err (!%p1890_p3)
}
 0x176   :  { %1469 = dma.vmem_to_hbm [thread:$0]  %s1464_s16, 4096, %s2268_s5, [#allocation4], %s1925_s7, %s1925_s7, %s1926_s8   ;;  %v821_v11 = vadd.f32 %v820_v10, %v2163_v8  ;;  %v934_v15 = vadd.f32 %v933_v14, %v2167_v18  ;;  %v822_v16 = vpop.f32.mrb[34].mxu0  ;;  %v935_v20 = vpop.f32.mrb[34].mxu1 }
 0x177   :  { %v823_v21 = vadd.f32 %v822_v16, %v2155_v6  ;;  %v936_v22 = vadd.f32 %v935_v20, %v2159_v7  ;;  %v824_v23 = vpop.f32.mrb[35].mxu0  ;;  %v937_v24 = vpop.f32.mrb[35].mxu1  ;;  %s1933_s5 = smov [#allocation9]  }
 0x178   :  { %v1660_v25 = vpack.c.bf16 %v821_v11, %v819_v13  ;;  %v1661_v26 = vpack.c.bf16 %v934_v15, %v932_v9  ;;  %v825_v27 = vadd.f32 %v824_v23, %v2163_v8  ;;  %v938_v28 = vadd.f32 %v937_v24, %v2167_v18  ;;  %v828_v31 = vpop.f32.mrb[36].mxu0  ;;  %v941_v32 = vpop.f32.mrb[36].mxu1  ;;  %s1475_s25 = sshll.u32 %s1933_s5, 4  ;;  %s1476_s25 = int_to_ptr.vmem [resolvable:$true] %s1475_s25 }
 0x179   :  { %v829_v33 = vadd.f32 %v828_v31, %v2155_v6  ;;  %v942_v34 = vadd.f32 %v941_v32, %v2159_v7  ;;  %v830_v35 = vpop.f32.mrb[37].mxu0  ;;  %v943_v36 = vpop.f32.mrb[37].mxu1  ;;  %s1894_s26 = scalar_lea.vmem %s1476_s25, 4096  ;;  %p1899_p5 = scmp.lt.s32.totalorder %s1476_s25, %s1476_s25 }
 0x17a   :  { %1426 = vst [vmem:[#allocation9] sm:$0xff] %v1660_v25  ;;  %1427 = vst [vmem:[#allocation9 + $0x8] sm:$0xff] %v1661_v26  ;;  %v1662_v29 = vpack.c.bf16 %v825_v27, %v823_v21  ;;  %v1663_v30 = vpack.c.bf16 %v938_v28, %v936_v22  ;;  %v831_v37 = vadd.f32 %v830_v35, %v2163_v8  ;;  %v832_v39 = vpop.f32.mrb[38].mxu0  ;;  %v945_v40 = vpop.f32.mrb[38].mxu1  ;;  %p1895_p4 = scmp.ne.s32.totalorder %s1476_s25, %s1894_s26  ;;  %p1900_p6 = scmp.lt.s32.totalorder %s1894_s26, %s1894_s26 }
 0x17b   :  { %v944_v38 = vadd.f32 %v943_v36, %v2167_v18  ;;  %v833_v41 = vadd.f32 %v832_v39, %v2155_v6  ;;  %v946_v42 = vadd.f32 %v945_v40, %v2159_v7  ;;  %v834_v43 = vpop.f32.mrb[39].mxu0  ;;  %v947_v44 = vpop.f32.mrb[39].mxu1 }
 0x17c   :  { %1428 = vst [vmem:[#allocation9 + $0x10] sm:$0xff] %v1662_v29  ;;  %1429 = vst [vmem:[#allocation9 + $0x18] sm:$0xff] %v1663_v30  ;;  %v1664_v45 = vpack.c.bf16 %v831_v37, %v829_v33  ;;  %v835_v47 = vadd.f32 %v834_v43, %v2163_v8  ;;  %v948_v48 = vadd.f32 %v947_v44, %v2167_v18  ;;  %p1901_p7 = por %p1900_p6, %p1899_p5 }
 0x17d   :  { %v1665_v46 = vpack.c.bf16 %v944_v38, %v942_v34  ;;  %v838_v51 = vpop.f32.mrb[40].mxu0  ;;  %v951_v52 = vpop.f32.mrb[40].mxu1 }
 0x17e   :  { %1430 = vst [vmem:[#allocation9 + $0x20] sm:$0xff] %v1664_v45  ;;  %v1666_v49 = vpack.c.bf16 %v835_v47, %v833_v41  ;;  %v1667_v50 = vpack.c.bf16 %v948_v48, %v946_v42  ;;  %v839_v53 = vadd.f32 %v838_v51, %v2155_v6  ;;  %v952_v54 = vadd.f32 %v951_v52, %v2159_v7  ;;  %v840_v55 = vpop.f32.mrb[41].mxu0  ;;  %v953_v56 = vpop.f32.mrb[41].mxu1  ;;  %p1902_p8 = pnand %p1901_p7, %p1895_p4 }
 0x17f   :  { %1431 = vst [vmem:[#allocation9 + $0x28] sm:$0xff] %v1665_v46  ;;  %v841_v57 = vadd.f32 %v840_v55, %v2163_v8  ;;  %v954_v58 = vadd.f32 %v953_v56, %v2167_v18  ;;  %v842_v59 = vpop.f32.mrb[42].mxu0  ;;  %v955_v60 = vpop.f32.mrb[42].mxu1 }
 0x180   :  { %1432 = vst [vmem:[#allocation9 + $0x30] sm:$0xff] %v1666_v49  ;;  %1433 = vst [vmem:[#allocation9 + $0x38] sm:$0xff] %v1667_v50  ;;  %v843_v61 = vadd.f32 %v842_v59, %v2155_v6  ;;  %v956_v62 = vadd.f32 %v955_v60, %v2159_v7  ;;  %v844_v63 = vpop.f32.mrb[43].mxu0  ;;  %v957_v1 = vpop.f32.mrb[43].mxu1 }
 0x181   :  { %v1668_v2 = vpack.c.bf16 %v841_v57, %v839_v53  ;;  %v1669_v3 = vpack.c.bf16 %v954_v58, %v952_v54  ;;  %v845_v4 = vadd.f32 %v844_v63, %v2163_v8  ;;  %v958_v5 = vadd.f32 %v957_v1, %v2167_v18 }
 0x183   :  { %1434 = vst [vmem:[#allocation9 + $0x40] sm:$0xff] %v1668_v2  ;;  %1435 = vst [vmem:[#allocation9 + $0x48] sm:$0xff] %v1669_v3  ;;  %v1670_v0 = vpack.c.bf16 %v845_v4, %v843_v61  ;;  %v1671_v17 = vpack.c.bf16 %v958_v5, %v956_v62 }
 0x185   :  { %1436 = vst [vmem:[#allocation9 + $0x50] sm:$0xff] %v1670_v0  ;;  %1437 = vst [vmem:[#allocation9 + $0x58] sm:$0xff] %v1671_v17  ;;  %v848_v12 = vpop.f32.mrb[44].mxu0  ;;  %v961_v19 = vpop.f32.mrb[44].mxu1 }
 0x186   :  { %v849_v13 = vadd.f32 %v848_v12, %v2155_v6  ;;  %v962_v9 = vadd.f32 %v961_v19, %v2159_v7  ;;  %v850_v10 = vpop.f32.mrb[45].mxu0  ;;  %v963_v14 = vpop.f32.mrb[45].mxu1 }
 0x187   :  { %v851_v11 = vadd.f32 %v850_v10, %v2163_v8  ;;  %v964_v15 = vadd.f32 %v963_v14, %v2167_v18  ;;  %v852_v16 = vpop.f32.mrb[46].mxu0  ;;  %v965_v20 = vpop.f32.mrb[46].mxu1 }
 0x188   :  { %v853_v21 = vadd.f32 %v852_v16, %v2155_v6  ;;  %v966_v22 = vadd.f32 %v965_v20, %v2159_v7  ;;  %v854_v23 = vpop.f32.mrb[47].mxu0  ;;  %v967_v24 = vpop.f32.mrb[47].mxu1 }
 0x189   :  { %v1672_v25 = vpack.c.bf16 %v851_v11, %v849_v13  ;;  %v1673_v26 = vpack.c.bf16 %v964_v15, %v962_v9  ;;  %v855_v27 = vadd.f32 %v854_v23, %v2163_v8  ;;  %v968_v28 = vadd.f32 %v967_v24, %v2167_v18 }
 0x18b   :  { %1438 = vst [vmem:[#allocation9 + $0x60] sm:$0xff] %v1672_v25  ;;  %1439 = vst [vmem:[#allocation9 + $0x68] sm:$0xff] %v1673_v26  ;;  %v1674_v29 = vpack.c.bf16 %v855_v27, %v853_v21  ;;  %v1675_v30 = vpack.c.bf16 %v968_v28, %v966_v22 }
 0x18d   :  { %1440 = vst [vmem:[#allocation9 + $0x70] sm:$0xff] %v1674_v29  ;;  %1441 = vst [vmem:[#allocation9 + $0x78] sm:$0xff] %v1675_v30  ;;  %v858_v31 = vpop.f32.mrb[48].mxu0  ;;  %v971_v32 = vpop.f32.mrb[48].mxu1 }
 0x18e   :  { %v859_v33 = vadd.f32 %v858_v31, %v2155_v6  ;;  %v972_v34 = vadd.f32 %v971_v32, %v2159_v7  ;;  %v860_v35 = vpop.f32.mrb[49].mxu0  ;;  %v973_v36 = vpop.f32.mrb[49].mxu1 }
 0x18f   :  { %v861_v37 = vadd.f32 %v860_v35, %v2163_v8  ;;  %v974_v38 = vadd.f32 %v973_v36, %v2167_v18  ;;  %v862_v39 = vpop.f32.mrb[50].mxu0  ;;  %v975_v40 = vpop.f32.mrb[50].mxu1 }
 0x190   :  { %v863_v41 = vadd.f32 %v862_v39, %v2155_v6  ;;  %v976_v42 = vadd.f32 %v975_v40, %v2159_v7  ;;  %v864_v43 = vpop.f32.mrb[51].mxu0  ;;  %v977_v44 = vpop.f32.mrb[51].mxu1 }
 0x191   :  { %v1676_v45 = vpack.c.bf16 %v861_v37, %v859_v33  ;;  %v1677_v46 = vpack.c.bf16 %v974_v38, %v972_v34  ;;  %v865_v47 = vadd.f32 %v864_v43, %v2163_v8  ;;  %v978_v48 = vadd.f32 %v977_v44, %v2167_v18 }
 0x193   :  { %1442 = vst [vmem:[#allocation9 + $0x80] sm:$0xff] %v1676_v45  ;;  %1443 = vst [vmem:[#allocation9 + $0x88] sm:$0xff] %v1677_v46  ;;  %v1678_v49 = vpack.c.bf16 %v865_v47, %v863_v41  ;;  %v1679_v50 = vpack.c.bf16 %v978_v48, %v976_v42 }
 0x195   :  { %1444 = vst [vmem:[#allocation9 + $0x90] sm:$0xff] %v1678_v49  ;;  %1445 = vst [vmem:[#allocation9 + $0x98] sm:$0xff] %v1679_v50  ;;  %v868_v51 = vpop.f32.mrb[52].mxu0  ;;  %v981_v52 = vpop.f32.mrb[52].mxu1 }
 0x196   :  { %v869_v53 = vadd.f32 %v868_v51, %v2155_v6  ;;  %v982_v54 = vadd.f32 %v981_v52, %v2159_v7  ;;  %v870_v55 = vpop.f32.mrb[53].mxu0  ;;  %v983_v56 = vpop.f32.mrb[53].mxu1 }
 0x197   :  { %v871_v57 = vadd.f32 %v870_v55, %v2163_v8  ;;  %v984_v58 = vadd.f32 %v983_v56, %v2167_v18  ;;  %v872_v59 = vpop.f32.mrb[54].mxu0  ;;  %v985_v60 = vpop.f32.mrb[54].mxu1 }
 0x198   :  { %v873_v61 = vadd.f32 %v872_v59, %v2155_v6  ;;  %v986_v62 = vadd.f32 %v985_v60, %v2159_v7  ;;  %v874_v63 = vpop.f32.mrb[55].mxu0  ;;  %v987_v1 = vpop.f32.mrb[55].mxu1 }
 0x199   :  { %v1680_v2 = vpack.c.bf16 %v871_v57, %v869_v53  ;;  %v1681_v3 = vpack.c.bf16 %v984_v58, %v982_v54  ;;  %v875_v4 = vadd.f32 %v874_v63, %v2163_v8  ;;  %v988_v5 = vadd.f32 %v987_v1, %v2167_v18 }
 0x19b   :  { %1446 = vst [vmem:[#allocation9 + $0xa0] sm:$0xff] %v1680_v2  ;;  %1447 = vst [vmem:[#allocation9 + $0xa8] sm:$0xff] %v1681_v3  ;;  %v1682_v0 = vpack.c.bf16 %v875_v4, %v873_v61  ;;  %v1683_v17 = vpack.c.bf16 %v988_v5, %v986_v62 }
 0x19d   :  { %1448 = vst [vmem:[#allocation9 + $0xb0] sm:$0xff] %v1682_v0  ;;  %1449 = vst [vmem:[#allocation9 + $0xb8] sm:$0xff] %v1683_v17  ;;  %v878_v12 = vpop.f32.mrb[56].mxu0  ;;  %v991_v19 = vpop.f32.mrb[56].mxu1 }
 0x19e   :  { %v879_v13 = vadd.f32 %v878_v12, %v2155_v6  ;;  %v992_v9 = vadd.f32 %v991_v19, %v2159_v7  ;;  %v880_v10 = vpop.f32.mrb[57].mxu0  ;;  %v993_v14 = vpop.f32.mrb[57].mxu1 }
 0x19f   :  { %v881_v11 = vadd.f32 %v880_v10, %v2163_v8  ;;  %v994_v15 = vadd.f32 %v993_v14, %v2167_v18  ;;  %v882_v16 = vpop.f32.mrb[58].mxu0  ;;  %v995_v20 = vpop.f32.mrb[58].mxu1 }
 0x1a0   :  { %v883_v21 = vadd.f32 %v882_v16, %v2155_v6  ;;  %v996_v22 = vadd.f32 %v995_v20, %v2159_v7  ;;  %v884_v23 = vpop.f32.mrb[59].mxu0  ;;  %v997_v24 = vpop.f32.mrb[59].mxu1 }
 0x1a1   :  { %v1684_v25 = vpack.c.bf16 %v881_v11, %v879_v13  ;;  %v1685_v26 = vpack.c.bf16 %v994_v15, %v992_v9  ;;  %v885_v27 = vadd.f32 %v884_v23, %v2163_v8  ;;  %v998_v28 = vadd.f32 %v997_v24, %v2167_v18 }
 0x1a3   :  { %1450 = vst [vmem:[#allocation9 + $0xc0] sm:$0xff] %v1684_v25  ;;  %1451 = vst [vmem:[#allocation9 + $0xc8] sm:$0xff] %v1685_v26  ;;  %v1686_v29 = vpack.c.bf16 %v885_v27, %v883_v21  ;;  %v1687_v30 = vpack.c.bf16 %v998_v28, %v996_v22 }
 0x1a5   :  { %1452 = vst [vmem:[#allocation9 + $0xd0] sm:$0xff] %v1686_v29  ;;  %1453 = vst [vmem:[#allocation9 + $0xd8] sm:$0xff] %v1687_v30  ;;  %v888_v31 = vpop.f32.mrb[60].mxu0  ;;  %v1001_v32 = vpop.f32.mrb[60].mxu1 }
 0x1a6   :  { %v889_v33 = vadd.f32 %v888_v31, %v2155_v6  ;;  %v1002_v34 = vadd.f32 %v1001_v32, %v2159_v7  ;;  %v890_v35 = vpop.f32.mrb[61].mxu0  ;;  %v1003_v36 = vpop.f32.mrb[61].mxu1 }
 0x1a7   :  { %v891_v37 = vadd.f32 %v890_v35, %v2163_v8  ;;  %v1004_v38 = vadd.f32 %v1003_v36, %v2167_v18  ;;  %v892_v39 = vpop.f32.mrb[62].mxu0  ;;  %v1005_v40 = vpop.f32.mrb[62].mxu1 }
 0x1a8   :  { %v893_v41 = vadd.f32 %v892_v39, %v2155_v6  ;;  %v1006_v42 = vadd.f32 %v1005_v40, %v2159_v7  ;;  %v894_v43 = vpop.f32.mrb[63].mxu0  ;;  %v1007_v44 = vpop.f32.mrb[63].mxu1 }
 0x1a9   :  { %v1688_v45 = vpack.c.bf16 %v891_v37, %v889_v33  ;;  %v1689_v46 = vpack.c.bf16 %v1004_v38, %v1002_v34  ;;  %v895_v47 = vadd.f32 %v894_v43, %v2163_v8  ;;  %v1008_v48 = vadd.f32 %v1007_v44, %v2167_v18 }
 0x1ab   :  { %1454 = vst [vmem:[#allocation9 + $0xe0] sm:$0xff] %v1688_v45  ;;  %1455 = vst [vmem:[#allocation9 + $0xe8] sm:$0xff] %v1689_v46  ;;  %v1690_v49 = vpack.c.bf16 %v895_v47, %v893_v41  ;;  %v1691_v50 = vpack.c.bf16 %v1008_v48, %v1006_v42 }
 0x1ad   :  { %1456 = vst [vmem:[#allocation9 + $0xf0] sm:$0xff] %v1690_v49  ;;  %1457 = vst [vmem:[#allocation9 + $0xf8] sm:$0xff] %v1691_v50 }
 0x1ae   :  { %1905 = shalt.err (!%p1902_p8)
}
 0x1af   :  { %s1906_s29 = scalar_lea.hbm %s2269_s6, 4096 }
 0x1b0   :  { %p1907_p9 = scmp.ne.s32.totalorder %s2269_s6, %s1906_s29  ;;  %p1910_p10 = scmp.lt.u32.totalorder %s1906_s29, %s2269_s6 }
 0x1b2   :  { %p1912_p11 = pnand %p1910_p10, %p1907_p9 }
 0x1b4   :  { %1915 = shalt.err (!%p1912_p11)
}
 0x1b5   :  { %1481 = dma.vmem_to_hbm [thread:$0]  %s1476_s25, 4096, %s2269_s6, [#allocation10], %s1925_s7, %s1925_s7, %s1926_s8  }
 0x1b6   :  { %1920 = dma.done.wait [#allocation4], 4096  }
 0x1b7   :  { %1921 = vsyncadd [#allocation4], 4294963200 }
 0x1b8   :  { %1922 = dma.done.wait [#allocation10], 4096  }
 0x1b9   :  { %1923 = vsyncadd [#allocation10], 4294963200 }
 0x1ba   :  { %1488 = vsyncpa [#allocation3], 1 }
 0x1bb   :  { %1489 = vsyncpa [#allocation6], 1 }
 0x1bc   :  { %1490 = vsyncpa [#allocation4], 1 }
 0x1bd   :  { %1491 = vsyncpa [#allocation10], 1 }

</bundles_post_ra>
